<compile_context>
chip_gen: v5e
topology: v5e:2x2
jax: 0.10.0
libtpu: 0.0.40
codegen_flags: <defaults>
</compile_context>

<pallas_src>
import jax
import jax.numpy as jnp
from jax.experimental import pallas as pl
from jax.experimental.pallas import tpu as pltpu

IN_FEATURES = 28 * 28     # 784  (full-extent block dim; no K padding needed)
HIDDEN = 512
OUT_FEATURES = 10
OUT_PADDED = 128          # lane-dense output width


def _round_up(n, m):
    return (n + m - 1) // m * m


def mlp_kernel(x_ref, w1_ref, w2_ref, w3_ref, b_ref, o_ref):
    b = b_ref[...]                                  # (3, 512) fp32 bias pack
    # Linear(784 -> 512) + ReLU. bf16 MXU inputs, fp32 accumulate, fp32 bias.
    h1 = jnp.dot(x_ref[...], w1_ref[...], preferred_element_type=jnp.float32)
    h1 = jnp.maximum(h1 + b[0:1, :], 0.0).astype(jnp.bfloat16)
    # Linear(512 -> 512) + ReLU
    h2 = jnp.dot(h1, w2_ref[...], preferred_element_type=jnp.float32)
    h2 = jnp.maximum(h2 + b[1:2, :], 0.0).astype(jnp.bfloat16)
    # Linear(512 -> 128)  (columns 10..127 are zero padding)
    logits = jnp.dot(h2, w3_ref[...], preferred_element_type=jnp.float32)
    o_ref[...] = (logits + b[2:3, :OUT_PADDED]).astype(o_ref.dtype)


def neural_network_forward(x, params, *, block_rows=None):
    """x: (B, 28, 28) float32, params: prepared (bf16/packed) -> (B, 10) f32."""
    w1, w2, w3, biases = params
    B = x.shape[0]

    # nn.Flatten() + bf16 cast (halves the x DMA bytes).
    x_flat = x.reshape(B, IN_FEATURES).astype(jnp.bfloat16)

    # Rows per grid step: big tiles for big batches, round small batches to 8.
    if block_rows is None:
        block_rows = 128 if B >= 128 else _round_up(B, 8)
    TM = block_rows
    B_pad = _round_up(B, TM)
    if B_pad != B:
        x_flat = jnp.zeros((B_pad, IN_FEATURES), jnp.bfloat16).at[:B].set(x_flat)
    n_steps = B_pad // TM

    logits_padded = pl.pallas_call(
        mlp_kernel,
        out_shape=jax.ShapeDtypeStruct((B_pad, OUT_PADDED), jnp.float32),
        grid_spec=pltpu.PrefetchScalarGridSpec(
            num_scalar_prefetch=0,
            grid=(n_steps,),
            in_specs=[
                # x: one row-tile per grid step.
                pl.BlockSpec((TM, IN_FEATURES), lambda i: (i, 0)),
                # Weights + bias pack: constant block index -> VMEM-resident
                # across all grid steps (streamed from HBM only once).
                pl.BlockSpec((IN_FEATURES, HIDDEN), lambda i: (0, 0)),
                pl.BlockSpec((HIDDEN, HIDDEN), lambda i: (0, 0)),
                pl.BlockSpec((HIDDEN, OUT_PADDED), lambda i: (0, 0)),
                pl.BlockSpec((3, HIDDEN), lambda i: (0, 0)),
            ],
            out_specs=pl.BlockSpec((TM, OUT_PADDED), lambda i: (i, 0)),
        ),
        compiler_params=pltpu.CompilerParams(
            dimension_semantics=("parallel",),
            vmem_limit_bytes=16 << 20,
        ),
    )(x_flat, w1, w2, w3, biases)

    return logits_padded[:B, :OUT_FEATURES]


def init_params(key):
    """fp32 master params, PyTorch-Linear-style uniform(-1/sqrt(fan_in), +)."""
    dims = [(IN_FEATURES, HIDDEN), (HIDDEN, HIDDEN), (HIDDEN, OUT_FEATURES)]
    params = []
    for fan_in, fan_out in dims:
        kw, kb, key = jax.random.split(key, 3)
        bound = 1.0 / jnp.sqrt(jnp.float32(fan_in))
        w = jax.random.uniform(kw, (fan_in, fan_out), jnp.float32, -bound, bound)
        b = jax.random.uniform(kb, (1, fan_out), jnp.float32, -bound, bound)
        params += [w, b]
    return params


def prepare_params(params_f32):
    """One-time prep: cast weights to bf16, zero-pad W3 (N 10->128), and pack
    the three fp32 biases into a single (3, 512) buffer (fewer input DMAs)."""
    w1, b1, w2, b2, w3, b3 = params_f32
    w1p = w1.astype(jnp.bfloat16)
    w2p = w2.astype(jnp.bfloat16)
    w3p = (jnp.zeros((HIDDEN, OUT_PADDED), jnp.bfloat16)
           .at[:, :OUT_FEATURES].set(w3.astype(jnp.bfloat16)))
    biases = jnp.zeros((3, HIDDEN), jnp.float32)
    biases = biases.at[0, :].set(b1.reshape(-1))
    biases = biases.at[1, :].set(b2.reshape(-1))
    biases = biases.at[2, :OUT_FEATURES].set(b3.reshape(-1))
    return (w1p, w2p, w3p, biases)


if __name__ == "__main__":
    key = jax.random.PRNGKey(0)
    k_x, k_p = jax.random.split(key)

    params_f32 = init_params(k_p)
    params = prepare_params(params_f32)
    w1, b1, w2, b2, w3, b3 = params_f32

    def ref_forward(x):
        xf = x.reshape(x.shape[0], -1)
        h = jnp.maximum(xf @ w1 + b1, 0.0)
        h = jnp.maximum(h @ w2 + b2, 0.0)
        return h @ w3 + b3

    # Small batch (like torch.rand(B, 28, 28)): single grid step.
    B = 8
    x = jax.random.uniform(k_x, (B, 28, 28), jnp.float32)
    logits = jax.block_until_ready(neural_network_forward(x, params))
    assert logits.shape == (B, OUT_FEATURES)
    assert jnp.allclose(logits, ref_forward(x), atol=5e-2, rtol=5e-2)

    # Multi-step grid with VMEM-resident weights + batch padding path
    # (24 rows, 16-row tiles -> pad to 32 -> 2 grid steps).
    B2 = 24
    x2 = jax.random.uniform(jax.random.PRNGKey(1), (B2, 28, 28), jnp.float32)
    logits2 = jax.block_until_ready(
        neural_network_forward(x2, params, block_rows=16))
    assert logits2.shape == (B2, OUT_FEATURES)
    assert jnp.allclose(logits2, ref_forward(x2), atol=5e-2, rtol=5e-2)

    print("KERNEL_OK")
</pallas_src>

<mosaic_0001>
module attributes {stable_mosaic.version = 11 : i64} {
  func.func @mlp_kernel(%arg0: i32, %arg1: memref<8x784xbf16, #tpu.memory_space<vmem>>, %arg2: memref<784x512xbf16, #tpu.memory_space<vmem>>, %arg3: memref<512x512xbf16, #tpu.memory_space<vmem>>, %arg4: memref<512x128xbf16, #tpu.memory_space<vmem>>, %arg5: memref<3x512xf32, #tpu.memory_space<vmem>>, %arg6: memref<8x128xf32, #tpu.memory_space<vmem>>) attributes {dimension_semantics = [#tpu.dimension_semantics<parallel>], iteration_bounds = array<i64: 1>, scalar_prefetch = 0 : i64, scratch_operands = 0 : i64, tpu.core_type = #tpu.core_type<tc>, window_params = [{transform_indices = @transform_0, window_bounds = array<i64: 8, 784>}, {pipeline_mode = #tpu.pipeline_mode<synchronous>, transform_indices = @transform_1, window_bounds = array<i64: 784, 512>}, {pipeline_mode = #tpu.pipeline_mode<synchronous>, transform_indices = @transform_2, window_bounds = array<i64: 512, 512>}, {pipeline_mode = #tpu.pipeline_mode<synchronous>, transform_indices = @transform_3, window_bounds = array<i64: 512, 128>}, {pipeline_mode = #tpu.pipeline_mode<synchronous>, transform_indices = @transform_4, window_bounds = array<i64: 3, 512>}, {transform_indices = @transform_5, window_bounds = array<i64: 8, 128>}]} {
    %c0 = arith.constant 0 : index
    %c0_0 = arith.constant 0 : index
    %0 = vector.load %arg5[%c0, %c0_0] : memref<3x512xf32, #tpu.memory_space<vmem>>, vector<3x512xf32>
    %c0_1 = arith.constant 0 : index
    %c0_2 = arith.constant 0 : index
    %1 = vector.load %arg1[%c0_1, %c0_2] : memref<8x784xbf16, #tpu.memory_space<vmem>>, vector<8x784xbf16>
    %c0_3 = arith.constant 0 : index
    %c0_4 = arith.constant 0 : index
    %2 = vector.load %arg2[%c0_3, %c0_4] : memref<784x512xbf16, #tpu.memory_space<vmem>>, vector<784x512xbf16>
    %cst = arith.constant dense<0.000000e+00> : vector<8x512xf32>
    %3 = tpu.matmul %1, %2, %cst {dimension_numbers = #tpu.dot_dimension_numbers<[1], [0], [0], [1], [0, 0, 1, 1], [], []>} : vector<8x784xbf16>, vector<784x512xbf16>, vector<8x512xf32> -> vector<8x512xf32>
    %4 = vector.extract_strided_slice %0 {offsets = [0, 0], sizes = [1, 512], strides = [1, 1]} : vector<3x512xf32> to vector<1x512xf32>
    %5 = vector.broadcast %4 : vector<1x512xf32> to vector<8x512xf32>
    %6 = arith.addf %3, %5 : vector<8x512xf32>
    %cst_5 = arith.constant 0.000000e+00 : f32
    %7 = vector.broadcast %cst_5 : f32 to vector<8x512xf32>
    %8 = arith.maximumf %6, %7 : vector<8x512xf32>
    %9 = arith.truncf %8 : vector<8x512xf32> to vector<8x512xbf16>
    %c0_6 = arith.constant 0 : index
    %c0_7 = arith.constant 0 : index
    %10 = vector.load %arg3[%c0_6, %c0_7] : memref<512x512xbf16, #tpu.memory_space<vmem>>, vector<512x512xbf16>
    %cst_8 = arith.constant dense<0.000000e+00> : vector<8x512xf32>
    %11 = tpu.matmul %9, %10, %cst_8 {dimension_numbers = #tpu.dot_dimension_numbers<[1], [0], [0], [1], [0, 0, 1, 1], [], []>} : vector<8x512xbf16>, vector<512x512xbf16>, vector<8x512xf32> -> vector<8x512xf32>
    %12 = vector.extract_strided_slice %0 {offsets = [1, 0], sizes = [1, 512], strides = [1, 1]} : vector<3x512xf32> to vector<1x512xf32>
    %13 = vector.broadcast %12 : vector<1x512xf32> to vector<8x512xf32>
    %14 = arith.addf %11, %13 : vector<8x512xf32>
    %cst_9 = arith.constant 0.000000e+00 : f32
    %15 = vector.broadcast %cst_9 : f32 to vector<8x512xf32>
    %16 = arith.maximumf %14, %15 : vector<8x512xf32>
    %17 = arith.truncf %16 : vector<8x512xf32> to vector<8x512xbf16>
    %c0_10 = arith.constant 0 : index
    %c0_11 = arith.constant 0 : index
    %18 = vector.load %arg4[%c0_10, %c0_11] : memref<512x128xbf16, #tpu.memory_space<vmem>>, vector<512x128xbf16>
    %cst_12 = arith.constant dense<0.000000e+00> : vector<8x128xf32>
    %19 = tpu.matmul %17, %18, %cst_12 {dimension_numbers = #tpu.dot_dimension_numbers<[1], [0], [0], [1], [0, 0, 1, 1], [], []>} : vector<8x512xbf16>, vector<512x128xbf16>, vector<8x128xf32> -> vector<8x128xf32>
    %20 = vector.extract_strided_slice %0 {offsets = [2, 0], sizes = [1, 128], strides = [1, 1]} : vector<3x512xf32> to vector<1x128xf32>
    %21 = vector.broadcast %20 : vector<1x128xf32> to vector<8x128xf32>
    %22 = arith.addf %19, %21 : vector<8x128xf32>
    %c0_13 = arith.constant 0 : index
    %c0_14 = arith.constant 0 : index
    %23 = vector.load %arg6[%c0_13, %c0_14] : memref<8x128xf32, #tpu.memory_space<vmem>>, vector<8x128xf32>
    tpu.vector_store %arg6[%c0_13, %c0_14], %22 {strides = array<i32>} : memref<8x128xf32, #tpu.memory_space<vmem>>, vector<8x128xf32>,
    return
  }
  func.func @transform_0(%arg0: i32) -> (i32, i32) {
    %c0_i32 = arith.constant 0 : i32
    %c0_i32_0 = arith.constant 0 : i32
    return %arg0, %c0_i32 : i32, i32
  }
  func.func @transform_1(%arg0: i32) -> (i32, i32) {
    %c0_i32 = arith.constant 0 : i32
    %c0_i32_0 = arith.constant 0 : i32
    %c0_i32_1 = arith.constant 0 : i32
    return %c0_i32, %c0_i32_0 : i32, i32
  }
  func.func @transform_2(%arg0: i32) -> (i32, i32) {
    %c0_i32 = arith.constant 0 : i32
    %c0_i32_0 = arith.constant 0 : i32
    %c0_i32_1 = arith.constant 0 : i32
    return %c0_i32, %c0_i32_0 : i32, i32
  }
  func.func @transform_3(%arg0: i32) -> (i32, i32) {
    %c0_i32 = arith.constant 0 : i32
    %c0_i32_0 = arith.constant 0 : i32
    %c0_i32_1 = arith.constant 0 : i32
    return %c0_i32, %c0_i32_0 : i32, i32
  }
  func.func @transform_4(%arg0: i32) -> (i32, i32) {
    %c0_i32 = arith.constant 0 : i32
    %c0_i32_0 = arith.constant 0 : i32
    %c0_i32_1 = arith.constant 0 : i32
    return %c0_i32, %c0_i32_0 : i32, i32
  }
  func.func @transform_5(%arg0: i32) -> (i32, i32) {
    %c0_i32 = arith.constant 0 : i32
    %c0_i32_0 = arith.constant 0 : i32
    return %arg0, %c0_i32 : i32, i32
  }
}

</mosaic_0001>

<bundles_post_ra>
// kernel: tpu_custom_call.1
= control target key start
LH: loop header
LB: loop body
LE: loop exit
PB: predicated region body
PF: predicated region fallthrough
CT: control target
= control target key end

     0   :  { %10 = vsyncpa [#allocation3], 0  ;;  %s5158_s0 = inlined_call_operand.hbm [shape: bf16[8,784], index: 0, kind: input, shape index: {}]   ;;  %s5159_s1 = inlined_call_operand.hbm [shape: bf16[784,512], index: 1, kind: input, shape index: {}]   ;;  %s5160_s2 = inlined_call_operand.hbm [shape: bf16[512,512], index: 2, kind: input, shape index: {}]   ;;  %s5161_s3 = inlined_call_operand.hbm [shape: bf16[512,128], index: 3, kind: input, shape index: {}]   ;;  %s5162_s4 = inlined_call_operand.hbm [shape: f32[3,512], index: 4, kind: input, shape index: {}]   ;;  %s5163_s5 = inlined_call_operand.hbm [shape: f32[8,128], index: 5, kind: output, shape index: {}]  }
   0x1   :  { %11 = vsyncpa [#allocation6], 0 }
   0x2   :  { %12 = vsyncpa [#allocation9], 0  ;;  %s29_s20 = sshll.u32 %s5159_s1, 4  ;;  %s30_s20 = int_to_ptr.hbm [resolvable:$true] %s29_s20 }
   0x3   :  { %13 = vsyncpa [#allocation4], 0  ;;  %s4964_s21 = smov [#allocation5]   ;;  %s55_s25 = sshll.u32 %s5161_s3, 4  ;;  %s56_s25 = int_to_ptr.hbm [resolvable:$true] %s55_s25 }
   0x4   :  { %s31_s22 = sshll.u32 %s4964_s21, 4  ;;  %s4965_s26 = smov 256   ;;  %s32_s22 = int_to_ptr.vmem [resolvable:$true] %s31_s22 }
   0x5   :  { %s4966_s27 = smov 16   ;;  %s4967_s28 = smov [#allocation8]  }
   0x6   :  { %37 = dma.hbm_to_vmem [thread:$0]  %s30_s20, 25088, %s32_s22, [#allocation6], %s4965_s26, %s4965_s26, %s4966_s27  }
   0x7   :  { %s57_s29 = sshll.u32 %s4967_s28, 4  ;;  %s4968_s30 = smov 64   ;;  %s58_s29 = int_to_ptr.vmem [resolvable:$true] %s57_s29 }
   0x8   :  { %s4969_s6 = smov 4   ;;  %s19_s8 = sshll.u32 %s5158_s0, 4  ;;  %s20_s8 = int_to_ptr.hbm [resolvable:$true] %s19_s8 }
   0x9   :  { %63 = dma.hbm_to_vmem [thread:$0]  %s56_s25, 4096, %s58_s29, [#allocation9], %s4968_s30, %s4968_s30, %s4969_s6  }
   0xa   :  { %s4970_s9 = smov [#allocation2]   ;;  %s42_s12 = sshll.u32 %s5160_s2, 4  ;;  %s43_s12 = int_to_ptr.hbm [resolvable:$true] %s42_s12 }
   0xb   :  { %s21_s10 = sshll.u32 %s4970_s9, 4  ;;  %s4971_s13 = smov [#allocation7]   ;;  %s22_s10 = int_to_ptr.vmem [resolvable:$true] %s21_s10 }
   0xc   :  { %24 = dma.hbm_to_vmem [thread:$0]  %s20_s8, 448, %s22_s10, [#allocation3]  }
   0xd   :  { %s44_s14 = sshll.u32 %s4971_s13, 4  ;;  %s69_s17 = sshll.u32 %s5162_s4, 4  ;;  %s45_s14 = int_to_ptr.vmem [resolvable:$true] %s44_s14  ;;  %s70_s17 = int_to_ptr.hbm [resolvable:$true] %s69_s17 }
   0xe   :  { %50 = dma.hbm_to_vmem [thread:$0]  %s43_s12, 16384, %s45_s14, [#allocation6], %s4965_s26, %s4965_s26, %s4966_s27  }
   0xf   :  { %s4972_s0 = smov [#allocation10]  }
  0x10   :  { %s71_s18 = sshll.u32 %s4972_s0, 4  ;;  %s72_s18 = int_to_ptr.vmem [resolvable:$true] %s71_s18 }
  0x11   :  { %74 = dma.hbm_to_vmem [thread:$0]  %s70_s17, 256, %s72_s18, [#allocation9]  }
  0x12   :  { %4956 = dma.done.wait [#allocation3], 448  }
  0x13   :  { %4957 = vsyncadd [#allocation3], 4294966848 }
  0x14   :  { %4958 = dma.done.wait [#allocation6], 41472  }
  0x15   :  { %4959 = vsyncadd [#allocation6], 4294925824 }
  0x16   :  { %4960 = dma.done.wait [#allocation9], 4352  }
  0x17   :  { %4961 = vsyncadd [#allocation9], 4294962944  ;;  %v3131_v0 = vld [vmem:[#allocation5 + $0xe0] sm:$0xf]  ;;  %v4475_v1 = vld [vmem:[#allocation5 + $0xec] sm:$0xf0] }
  0x18   :  { %v3259_v2 = vld [vmem:[#allocation5 + $0x1e0] sm:$0xf]  ;;  %v3132_v3 = vor.u32 %v4475_v1, %v3131_v0  ;;  %v4507_v4 = vld [vmem:[#allocation5 + $0x1ec] sm:$0xf0]  ;;  %vm1316_vm0 = vcmask 130048   ;;  %s4973_s2 = smov [#allocation11]  }
  0x19   :  { %v3387_v5 = vld [vmem:[#allocation5 + $0x2e0] sm:$0xf]  ;;  %v4539_v6 = vld [vmem:[#allocation5 + $0x2ec] sm:$0xf0]  ;;  %v3260_v7 = vor.u32 %v4507_v4, %v3259_v2  ;;  %s3003_s4 = sshll.u32 %s4973_s2, 4  ;;  %s3005_s21 = sshll.u32 %s5163_s5, 4  ;;  %s3004_s4 = int_to_ptr.vmem [resolvable:$true] %s3003_s4  ;;  %s3006_s21 = int_to_ptr.hbm [resolvable:$true] %s3005_s21 }
  0x1a   :  { %v3388_v8 = vor.u32 %v4539_v6, %v3387_v5  ;;  %v3515_v9 = vld [vmem:[#allocation5 + $0x3e0] sm:$0xf]  ;;  %v4571_v10 = vld [vmem:[#allocation5 + $0x3ec] sm:$0xf0]  ;;  %1320 = vmatpush.bf16.msra.mxu0 %v3132_v3 }
  0x1b   :  { %v3115_v11 = vld [vmem:[#allocation5 + $0xc0] sm:$0xf]  ;;  %v3516_v12 = vor.u32 %v4571_v10, %v3515_v9  ;;  %v4471_v13 = vld [vmem:[#allocation5 + $0xcc] sm:$0xf0]  ;;  %1333 = vmatpush.bf16.msra.mxu1 %v3260_v7 }
  0x1c   :  { %v3243_v14 = vld [vmem:[#allocation5 + $0x1c0] sm:$0xf]  ;;  %v4503_v15 = vld [vmem:[#allocation5 + $0x1cc] sm:$0xf0]  ;;  %1346 = vmatpush.bf16.msra.mxu2 %v3388_v8  ;;  %v3116_v16 = vor.u32 %v4471_v13, %v3115_v11 }
  0x1d   :  { %v3244_v17 = vor.u32 %v4503_v15, %v3243_v14  ;;  %v3371_v18 = vld [vmem:[#allocation5 + $0x2c0] sm:$0xf]  ;;  %v4535_v19 = vld [vmem:[#allocation5 + $0x2cc] sm:$0xf0]  ;;  %1359 = vmatpush.bf16.msra.mxu3 %v3516_v12 }
  0x1e   :  { %v3499_v20 = vld [vmem:[#allocation5 + $0x3c0] sm:$0xf]  ;;  %v3372_v21 = vor.u32 %v4535_v19, %v3371_v18  ;;  %v4567_v22 = vld [vmem:[#allocation5 + $0x3cc] sm:$0xf0]  ;;  %1321 = vmatpush.bf16.msra.mxu0 %v3116_v16 }
  0x1f   :  { %v3099_v23 = vld [vmem:[#allocation5 + $0xa0] sm:$0xf]  ;;  %v4467_v24 = vld [vmem:[#allocation5 + $0xac] sm:$0xf0]  ;;  %v3500_v25 = vor.u32 %v4567_v22, %v3499_v20  ;;  %1334 = vmatpush.bf16.msra.mxu1 %v3244_v17 }
  0x20   :  { %v3227_v26 = vld [vmem:[#allocation5 + $0x1a0] sm:$0xf]  ;;  %v4499_v27 = vld [vmem:[#allocation5 + $0x1ac] sm:$0xf0]  ;;  %v3100_v29 = vor.u32 %v4467_v24, %v3099_v23  ;;  %1347 = vmatpush.bf16.msra.mxu2 %v3372_v21 }
  0x21   :  { %v3355_v28 = vld [vmem:[#allocation5 + $0x2a0] sm:$0xf]  ;;  %v4531_v30 = vld [vmem:[#allocation5 + $0x2ac] sm:$0xf0]  ;;  %v3228_v33 = vor.u32 %v4499_v27, %v3227_v26  ;;  %1360 = vmatpush.bf16.msra.mxu3 %v3500_v25 }
  0x22   :  { %v3483_v31 = vld [vmem:[#allocation5 + $0x3a0] sm:$0xf]  ;;  %v4563_v32 = vld [vmem:[#allocation5 + $0x3ac] sm:$0xf0]  ;;  %v3356_v34 = vor.u32 %v4531_v30, %v3355_v28  ;;  %1322 = vmatpush.bf16.msra.mxu0 %v3100_v29 }
  0x23   :  { %v3083_v35 = vld [vmem:[#allocation5 + $0x80] sm:$0xf]  ;;  %v4463_v36 = vld [vmem:[#allocation5 + $0x8c] sm:$0xf0]  ;;  %v3484_v38 = vor.u32 %v4563_v32, %v3483_v31  ;;  %1335 = vmatpush.bf16.msra.mxu1 %v3228_v33 }
  0x24   :  { %v3211_v37 = vld [vmem:[#allocation5 + $0x180] sm:$0xf]  ;;  %v4495_v39 = vld [vmem:[#allocation5 + $0x18c] sm:$0xf0]  ;;  %v3084_v44 = vor.u32 %v4463_v36, %v3083_v35  ;;  %1348 = vmatpush.bf16.msra.mxu2 %v3356_v34  ;;  %v4473_v34 = vld [vmem:[#allocation5 + $0xe4] sm:$0xf] }
  0x25   :  { %v3339_v40 = vld [vmem:[#allocation5 + $0x280] sm:$0xf]  ;;  %v4527_v41 = vld [vmem:[#allocation5 + $0x28c] sm:$0xf0]  ;;  %v3212_v45 = vor.u32 %v4495_v39, %v3211_v37  ;;  %1361 = vmatpush.bf16.msra.mxu3 %v3484_v38  ;;  %v3133_v35 = vld [vmem:[#allocation5 + $0xf0] sm:$0xf0] }
  0x26   :  { %v3467_v42 = vld [vmem:[#allocation5 + $0x380] sm:$0xf]  ;;  %v4559_v43 = vld [vmem:[#allocation5 + $0x38c] sm:$0xf0]  ;;  %v3340_v46 = vor.u32 %v4527_v41, %v3339_v40  ;;  %1323 = vmatpush.bf16.msra.mxu0 %v3084_v44  ;;  %v98_v37 = vld [vmem:[#allocation2] sm:$0xff] }
  0x27   :  { %v3067_v47 = vld [vmem:[#allocation5 + $0x60] sm:$0xf]  ;;  %v4459_v48 = vld [vmem:[#allocation5 + $0x6c] sm:$0xf0]  ;;  %v3468_v50 = vor.u32 %v4559_v43, %v3467_v42  ;;  %1336 = vmatpush.bf16.msra.mxu1 %v3212_v45  ;;  %v316_v41 = vunpack.c.l.b16 %v98_v37 }
  0x28   :  { %v3195_v49 = vld [vmem:[#allocation5 + $0x160] sm:$0xf]  ;;  %v4491_v51 = vld [vmem:[#allocation5 + $0x16c] sm:$0xf0]  ;;  %v3068_v56 = vor.u32 %v4459_v48, %v3067_v47  ;;  %1349 = vmatpush.bf16.msra.mxu2 %v3340_v46  ;;  %v4505_v46 = vld [vmem:[#allocation5 + $0x1e4] sm:$0xf] }
  0x29   :  { %v3323_v52 = vld [vmem:[#allocation5 + $0x260] sm:$0xf]  ;;  %v4523_v53 = vld [vmem:[#allocation5 + $0x26c] sm:$0xf0]  ;;  %v3196_v57 = vor.u32 %v4491_v51, %v3195_v49  ;;  %1362 = vmatpush.bf16.msra.mxu3 %v3468_v50  ;;  %v3261_v47 = vld [vmem:[#allocation5 + $0x1f0] sm:$0xf0]  ;;  %v3136_v49 = vor.u32 %v4473_v34, %v3133_v35 }
  0x2a   :  { %v3451_v54 = vld [vmem:[#allocation5 + $0x360] sm:$0xf]  ;;  %v4555_v55 = vld [vmem:[#allocation5 + $0x36c] sm:$0xf0]  ;;  %v3324_v58 = vor.u32 %v4523_v53, %v3323_v52  ;;  %1324 = vmatpush.bf16.msra.mxu0 %v3068_v56  ;;  %v3117_v56 = vld [vmem:[#allocation5 + $0xd0] sm:$0xf0] }
  0x2b   :  { %v3051_v59 = vld [vmem:[#allocation5 + $0x40] sm:$0xf]  ;;  %v4455_v60 = vld [vmem:[#allocation5 + $0x4c] sm:$0xf0]  ;;  %v3452_v62 = vor.u32 %v4555_v55, %v3451_v54  ;;  %1337 = vmatpush.bf16.msra.mxu1 %v3196_v57  ;;  %v4469_v55 = vld [vmem:[#allocation5 + $0xc4] sm:$0xf]  ;;  %v5021_v57 = vpack.c.b16 %v316_v41, %v316_v41 }
  0x2c   :  { %v3179_v61 = vld [vmem:[#allocation5 + $0x140] sm:$0xf]  ;;  %v4487_v63 = vld [vmem:[#allocation5 + $0x14c] sm:$0xf0]  ;;  %v3052_v4 = vor.u32 %v4455_v60, %v3051_v59  ;;  %1350 = vmatpush.bf16.msra.mxu2 %v3324_v58  ;;  %v317_v58 = vunpack.c.h.b16 %v98_v37  ;;  %v3069_v34 = vld [vmem:[#allocation5 + $0x70] sm:$0xf0] }
  0x2d   :  { %v3307_v0 = vld [vmem:[#allocation5 + $0x240] sm:$0xf]  ;;  %v4519_v1 = vld [vmem:[#allocation5 + $0x24c] sm:$0xf0]  ;;  %v3180_v5 = vor.u32 %v4487_v63, %v3179_v61  ;;  %1363 = vmatpush.bf16.msra.mxu3 %v3452_v62  ;;  %v3264_v61 = vor.u32 %v4505_v46, %v3261_v47  ;;  %v4501_v63 = vld [vmem:[#allocation5 + $0x1c4] sm:$0xf] }
  0x2e   :  { %v3435_v2 = vld [vmem:[#allocation5 + $0x340] sm:$0xf]  ;;  %v4551_v3 = vld [vmem:[#allocation5 + $0x34c] sm:$0xf0]  ;;  %v3308_v6 = vor.u32 %v4519_v1, %v3307_v0  ;;  %1325 = vmatpush.bf16.msra.mxu0 %v3052_v4  ;;  %v3245_v0 = vld [vmem:[#allocation5 + $0x1d0] sm:$0xf0] }
  0x2f   :  { %v3035_v7 = vld [vmem:[#allocation5 + $0x20] sm:$0xf]  ;;  %v4451_v8 = vld [vmem:[#allocation5 + $0x2c] sm:$0xf0]  ;;  %v3436_v10 = vor.u32 %v4551_v3, %v3435_v2  ;;  %1338 = vmatpush.bf16.msra.mxu1 %v3180_v5  ;;  %v3120_v2 = vor.u32 %v4469_v55, %v3117_v56  ;;  %v4453_v46 = vld [vmem:[#allocation5 + $0x44] sm:$0xf] }
  0x30   :  { %v3163_v9 = vld [vmem:[#allocation5 + $0x120] sm:$0xf]  ;;  %v4483_v11 = vld [vmem:[#allocation5 + $0x12c] sm:$0xf0]  ;;  %v3036_v17 = vor.u32 %v4451_v8, %v3035_v7  ;;  %1351 = vmatpush.bf16.msra.mxu2 %v3308_v6  ;;  %v4465_v7 = vld [vmem:[#allocation5 + $0xa4] sm:$0xf] }
  0x31   :  { %v3291_v12 = vld [vmem:[#allocation5 + $0x220] sm:$0xf]  ;;  %v4515_v13 = vld [vmem:[#allocation5 + $0x22c] sm:$0xf0]  ;;  %v3164_v21 = vor.u32 %v4483_v11, %v3163_v9  ;;  %1364 = vmatpush.bf16.msra.mxu3 %v3436_v10  ;;  %v3101_v8 = vld [vmem:[#allocation5 + $0xb0] sm:$0xf0]  ;;  %v5027_v9 = vpack.c.b16 %v317_v58, %v317_v58  ;;  %v3248_v10 = vor.u32 %v4501_v63, %v3245_v0 }
  0x32   :  { %v3419_v14 = vld [vmem:[#allocation5 + $0x320] sm:$0xf]  ;;  %v4547_v15 = vld [vmem:[#allocation5 + $0x32c] sm:$0xf0]  ;;  %v3292_v22 = vor.u32 %v4515_v13, %v3291_v12  ;;  %1326 = vmatpush.bf16.msra.mxu0 %v3036_v17  ;;  %v4497_v12 = vld [vmem:[#allocation5 + $0x1a4] sm:$0xf] }
  0x33   :  { %v3019_v16 = vld [vmem:[#allocation5] sm:$0xf]  ;;  %v4447_v18 = vld [vmem:[#allocation5 + $0xc] sm:$0xf0]  ;;  %v3420_v26 = vor.u32 %v4547_v15, %v3419_v14  ;;  %1339 = vmatpush.bf16.msra.mxu1 %v3164_v21  ;;  %v3229_v13 = vld [vmem:[#allocation5 + $0x1b0] sm:$0xf0]  ;;  %v3104_v15 = vor.u32 %v4465_v7, %v3101_v8 }
  0x34   :  { %v3147_v19 = vld [vmem:[#allocation5 + $0x100] sm:$0xf]  ;;  %v4479_v20 = vld [vmem:[#allocation5 + $0x10c] sm:$0xf0]  ;;  %v3020_v33 = vor.u32 %v4447_v18, %v3019_v16  ;;  %1352 = vmatpush.bf16.msra.mxu2 %v3292_v22  ;;  %v3085_v21 = vld [vmem:[#allocation5 + $0x90] sm:$0xf0] }
  0x35   :  { %v3275_v23 = vld [vmem:[#allocation5 + $0x200] sm:$0xf]  ;;  %v4511_v24 = vld [vmem:[#allocation5 + $0x20c] sm:$0xf0]  ;;  %v3148_v38 = vor.u32 %v4479_v20, %v3147_v19  ;;  %1365 = vmatpush.bf16.msra.mxu3 %v3420_v26  ;;  %v4461_v20 = vld [vmem:[#allocation5 + $0x84] sm:$0xf] }
  0x36   :  { %v99_v25 = vld [vmem:[#allocation2 + $0x8] sm:$0xff]  ;;  %v3403_v27 = vld [vmem:[#allocation5 + $0x300] sm:$0xf]  ;;  %v3276_v39 = vor.u32 %v4511_v24, %v3275_v23  ;;  %1327 = vmatpush.bf16.msra.mxu0 %v3020_v33  ;;  %v101_v22 = vld [vmem:[#allocation2 + $0x18] sm:$0xf]  ;;  %v3232_v23 = vor.u32 %v4497_v12, %v3229_v13 }
  0x37   :  { %v4543_v28 = vld [vmem:[#allocation5 + $0x30c] sm:$0xf0]  ;;  %v3643_v29 = vld [vmem:[#allocation5 + $0x4e0] sm:$0xf]  ;;  %v318_v36 = vunpack.c.l.b16 %v99_v25  ;;  %v319_v42 = vunpack.c.h.b16 %v99_v25  ;;  %1340 = vmatpush.bf16.msra.mxu1 %v3148_v38  ;;  %v4493_v25 = vld [vmem:[#allocation5 + $0x184] sm:$0xf]  ;;  %v322_v35 = vunpack.c.l.b16 %v101_v22 }
  0x38   :  { %v4603_v30 = vld [vmem:[#allocation5 + $0x4ec] sm:$0xf0]  ;;  %v3771_v31 = vld [vmem:[#allocation5 + $0x5e0] sm:$0xf]  ;;  %v3404_v43 = vor.u32 %v4543_v28, %v3403_v27  ;;  %1353 = vmatpush.bf16.msra.mxu2 %v3276_v39  ;;  %v3213_v26 = vld [vmem:[#allocation5 + $0x190] sm:$0xf0]  ;;  %v3088_v28 = vor.u32 %v4461_v20, %v3085_v21 }
  0x39   :  { %v4635_v32 = vld [vmem:[#allocation5 + $0x5ec] sm:$0xf0]  ;;  %v3787_v40 = vld [vmem:[#allocation5 + $0x600] sm:$0xf]  ;;  %v3644_v44 = vor.u32 %v4603_v30, %v3643_v29  ;;  %v5019_v53 = vpack.c.b16 %v318_v36, %v318_v36  ;;  %v5023_v60 = vpack.c.b16 %v319_v42, %v319_v42  ;;  %1328 = vmatmul.bf16.vlgmr.msra.gmra.mxu0 %v5021_v57  ;;  %v4457_v33 = vld [vmem:[#allocation5 + $0x64] sm:$0xf]  ;;  %v3216_v36 = vor.u32 %v4493_v25, %v3213_v26 }
  0x3a   :  { %v4639_v45 = vld [vmem:[#allocation5 + $0x60c] sm:$0xf0]  ;;  %v3772_v48 = vor.u32 %v4635_v32, %v3771_v31  ;;  %v3627_v50 = vld [vmem:[#allocation5 + $0x4c0] sm:$0xf]  ;;  %1366 = vmatpush.bf16.msra.mxu3 %v3404_v43  ;;  %1341 = vmatmul.bf16.vlgmr.msra.gmra.mxu1 %v5027_v9  ;;  %v4489_v38 = vld [vmem:[#allocation5 + $0x164] sm:$0xf]  ;;  %v3072_v41 = vor.u32 %v4457_v33, %v3069_v34 }
  0x3b   :  { %v4599_v51 = vld [vmem:[#allocation5 + $0x4cc] sm:$0xf0]  ;;  %v3755_v52 = vld [vmem:[#allocation5 + $0x5c0] sm:$0xf]  ;;  %v3788_v59 = vor.u32 %v4639_v45, %v3787_v40  ;;  %1372 = vmatpush.bf16.msrb.mxu0 %v3644_v44  ;;  %1354 = vmatmul.bf16.vlgmr.msra.gmra.mxu2 %v5019_v53  ;;  %v3197_v39 = vld [vmem:[#allocation5 + $0x170] sm:$0xf0] }
  0x3c   :  { %v4631_v54 = vld [vmem:[#allocation5 + $0x5cc] sm:$0xf0]  ;;  %v3628_v62 = vor.u32 %v4599_v51, %v3627_v50  ;;  %1385 = vmatpush.bf16.msrb.mxu1 %v3772_v48  ;;  %v3611_v3 = vld [vmem:[#allocation5 + $0x4a0] sm:$0xf]  ;;  %v3053_v47 = vld [vmem:[#allocation5 + $0x50] sm:$0xf0]  ;;  %v5031_v48 = vpack.c.b16 %v322_v35, %v322_v35 }
  0x3d   :  { %v3756_v1 = vor.u32 %v4631_v54, %v3755_v52  ;;  %v4595_v4 = vld [vmem:[#allocation5 + $0x4ac] sm:$0xf0]  ;;  %v3739_v5 = vld [vmem:[#allocation5 + $0x5a0] sm:$0xf]  ;;  %1405 = vmatpush.bf16.msrb.mxu2 %v3788_v59  ;;  %1367 = vmatmul.bf16.vlgmr.msra.gmra.mxu3 %v5023_v60  ;;  %v4485_v51 = vld [vmem:[#allocation5 + $0x144] sm:$0xf]  ;;  %v3056_v55 = vor.u32 %v4453_v46, %v3053_v47 }
  0x3e   :  { %1411 = vmatpush.bf16.msrb.mxu3 %v3136_v49  ;;  %v4627_v6 = vld [vmem:[#allocation5 + $0x5ac] sm:$0xf0]  ;;  %v3612_v11 = vor.u32 %v4595_v4, %v3611_v3  ;;  %v3595_v16 = vld [vmem:[#allocation5 + $0x480] sm:$0xf]  ;;  %v3200_v49 = vor.u32 %v4489_v38, %v3197_v39  ;;  %v3181_v52 = vld [vmem:[#allocation5 + $0x150] sm:$0xf0] }
  0x3f   :  { %1373 = vmatpush.bf16.msrb.mxu0 %v3628_v62  ;;  %v3740_v14 = vor.u32 %v4627_v6, %v3739_v5  ;;  %v4591_v17 = vld [vmem:[#allocation5 + $0x48c] sm:$0xf0]  ;;  %v3723_v18 = vld [vmem:[#allocation5 + $0x580] sm:$0xf]  ;;  %v4449_v62 = vld [vmem:[#allocation5 + $0x24] sm:$0xf] }
  0x40   :  { %1386 = vmatpush.bf16.msrb.mxu1 %v3756_v1  ;;  %v4623_v19 = vld [vmem:[#allocation5 + $0x58c] sm:$0xf0]  ;;  %v3596_v24 = vor.u32 %v4591_v17, %v3595_v16  ;;  %v3579_v29 = vld [vmem:[#allocation5 + $0x460] sm:$0xf]  ;;  %v3037_v63 = vld [vmem:[#allocation5 + $0x30] sm:$0xf0]  ;;  %v3184_v1 = vor.u32 %v4485_v51, %v3181_v52 }
  0x41   :  { %1424 = vmatpush.bf16.msra.mxu2 %v3264_v61  ;;  %v3724_v27 = vor.u32 %v4623_v19, %v3723_v18  ;;  %v4587_v30 = vld [vmem:[#allocation5 + $0x46c] sm:$0xf0]  ;;  %v3707_v31 = vld [vmem:[#allocation5 + $0x560] sm:$0xf]  ;;  %v4481_v0 = vld [vmem:[#allocation5 + $0x124] sm:$0xf]  ;;  %v3040_v7 = vor.u32 %v4449_v62, %v3037_v63 }
  0x42   :  { %1412 = vmatpush.bf16.msrb.mxu3 %v3120_v2  ;;  %v4619_v32 = vld [vmem:[#allocation5 + $0x56c] sm:$0xf0]  ;;  %v3580_v37 = vor.u32 %v4587_v30, %v3579_v29  ;;  %v3563_v42 = vld [vmem:[#allocation5 + $0x440] sm:$0xf]  ;;  %v3165_v3 = vld [vmem:[#allocation5 + $0x130] sm:$0xf0] }
  0x43   :  { %1374 = vmatpush.bf16.msrb.mxu0 %v3612_v11  ;;  %v3708_v40 = vor.u32 %v4619_v32, %v3707_v31  ;;  %v4583_v43 = vld [vmem:[#allocation5 + $0x44c] sm:$0xf0]  ;;  %v3691_v44 = vld [vmem:[#allocation5 + $0x540] sm:$0xf]  ;;  %v100_v5 = vld [vmem:[#allocation2 + $0x10] sm:$0xff]  ;;  %v3168_v19 = vor.u32 %v4481_v0, %v3165_v3 }
  0x44   :  { %1387 = vmatpush.bf16.msrb.mxu1 %v3740_v14  ;;  %v4615_v45 = vld [vmem:[#allocation5 + $0x54c] sm:$0xf0]  ;;  %v3564_v50 = vor.u32 %v4583_v43, %v3563_v42  ;;  %v3547_v56 = vld [vmem:[#allocation5 + $0x420] sm:$0xf]  ;;  %v4445_v12 = vld [vmem:[#allocation5 + $0x4] sm:$0xf]  ;;  %v320_v18 = vunpack.c.l.b16 %v100_v5 }
  0x45   :  { %1425 = vmatpush.bf16.msra.mxu2 %v3248_v10  ;;  %v3692_v54 = vor.u32 %v4615_v45, %v3691_v44  ;;  %v4579_v58 = vld [vmem:[#allocation5 + $0x42c] sm:$0xf0]  ;;  %v3675_v59 = vld [vmem:[#allocation5 + $0x520] sm:$0xf]  ;;  %v3021_v13 = vld [vmem:[#allocation5 + $0x10] sm:$0xf0] }
  0x46   :  { %1413 = vmatpush.bf16.msrb.mxu3 %v3104_v15  ;;  %v4611_v61 = vld [vmem:[#allocation5 + $0x52c] sm:$0xf0]  ;;  %v3548_v2 = vor.u32 %v4579_v58, %v3547_v56  ;;  %v3531_v4 = vld [vmem:[#allocation5 + $0x400] sm:$0xf]  ;;  %v4537_v14 = vld [vmem:[#allocation5 + $0x2e4] sm:$0xf]  ;;  %v3024_v25 = vor.u32 %v4445_v12, %v3021_v13  ;;  %v5035_v34 = vpack.c.b16 %v320_v18, %v320_v18 }
  0x47   :  { %1375 = vmatpush.bf16.msrb.mxu0 %v3596_v24  ;;  %v3676_v6 = vor.u32 %v4611_v61, %v3675_v59  ;;  %v4575_v8 = vld [vmem:[#allocation5 + $0x40c] sm:$0xf0]  ;;  %v3659_v10 = vld [vmem:[#allocation5 + $0x500] sm:$0xf]  ;;  %v3389_v15 = vld [vmem:[#allocation5 + $0x2f0] sm:$0xf0] }
  0x48   :  { %1388 = vmatpush.bf16.msrb.mxu1 %v3724_v27  ;;  %v4607_v11 = vld [vmem:[#allocation5 + $0x50c] sm:$0xf0]  ;;  %v4569_v16 = vld [vmem:[#allocation5 + $0x3e4] sm:$0xf]  ;;  %v3517_v17 = vld [vmem:[#allocation5 + $0x3f0] sm:$0xf0]  ;;  %v3532_v20 = vor.u32 %v4575_v8, %v3531_v4 }
  0x49   :  { %1426 = vmatpush.bf16.msra.mxu2 %v3232_v23  ;;  %v4601_v21 = vld [vmem:[#allocation5 + $0x4e4] sm:$0xf]  ;;  %v3645_v22 = vld [vmem:[#allocation5 + $0x4f0] sm:$0xf0]  ;;  %v321_v23 = vunpack.c.h.b16 %v100_v5  ;;  %v3660_v24 = vor.u32 %v4607_v11, %v3659_v10  ;;  %v3520_v29 = vor.u32 %v4569_v16, %v3517_v17 }
  0x4a   :  { %1414 = vmatpush.bf16.msrb.mxu3 %v3088_v28  ;;  %v4477_v26 = vld [vmem:[#allocation5 + $0x104] sm:$0xf]  ;;  %v3149_v27 = vld [vmem:[#allocation5 + $0x110] sm:$0xf0]  ;;  %v3392_v28 = vor.u32 %v4537_v14, %v3389_v15  ;;  %v3648_v33 = vor.u32 %v4601_v21, %v3645_v22 }
  0x4b   :  { %1376 = vmatpush.bf16.msrb.mxu0 %v3580_v37  ;;  %3801 = vmatmul.msk.bf16.vlgmr.msrb.gmra.mxu2 %vm1316_vm0, %v5031_v48  ;;  %v4633_v30 = vld [vmem:[#allocation5 + $0x5e4] sm:$0xf]  ;;  %v3773_v31 = vld [vmem:[#allocation5 + $0x5f0] sm:$0xf0]  ;;  %v3152_v38 = vor.u32 %v4477_v26, %v3149_v27  ;;  %v5037_v39 = vpack.c.b16 %v321_v23, %v321_v23 }
  0x4c   :  { %1389 = vmatpush.bf16.msrb.mxu1 %v3708_v40  ;;  %v4533_v32 = vld [vmem:[#allocation5 + $0x2c4] sm:$0xf]  ;;  %v3373_v35 = vld [vmem:[#allocation5 + $0x2d0] sm:$0xf0]  ;;  %v3776_v42 = vor.u32 %v4633_v30, %v3773_v31 }
  0x4d   :  { %1427 = vmatpush.bf16.msra.mxu2 %v3216_v36  ;;  %v4565_v36 = vld [vmem:[#allocation5 + $0x3c4] sm:$0xf]  ;;  %v3501_v37 = vld [vmem:[#allocation5 + $0x3d0] sm:$0xf0]  ;;  %v3376_v43 = vor.u32 %v4533_v32, %v3373_v35 }
  0x4e   :  { %1415 = vmatpush.bf16.msrb.mxu3 %v3072_v41  ;;  %v4597_v40 = vld [vmem:[#allocation5 + $0x4c4] sm:$0xf]  ;;  %v3629_v41 = vld [vmem:[#allocation5 + $0x4d0] sm:$0xf0]  ;;  %v3504_v44 = vor.u32 %v4565_v36, %v3501_v37 }
  0x4f   :  { %1377 = vmatpush.bf16.msrb.mxu0 %v3564_v50  ;;  %v4629_v45 = vld [vmem:[#allocation5 + $0x5c4] sm:$0xf]  ;;  %v3757_v46 = vld [vmem:[#allocation5 + $0x5d0] sm:$0xf0] }
  0x50   :  { %1390 = vmatpush.bf16.msrb.mxu1 %v3692_v54  ;;  %v4529_v47 = vld [vmem:[#allocation5 + $0x2a4] sm:$0xf]  ;;  %v3357_v50 = vld [vmem:[#allocation5 + $0x2b0] sm:$0xf0]  ;;  %v3760_v56 = vor.u32 %v4629_v45, %v3757_v46 }
  0x51   :  { %1428 = vmatpush.bf16.msra.mxu2 %v3200_v49  ;;  %v3632_v49 = vor.u32 %v4597_v40, %v3629_v41  ;;  %v4561_v51 = vld [vmem:[#allocation5 + $0x3a4] sm:$0xf]  ;;  %v3485_v52 = vld [vmem:[#allocation5 + $0x3b0] sm:$0xf0]  ;;  %v3360_v58 = vor.u32 %v4529_v47, %v3357_v50 }
  0x52   :  { %1416 = vmatpush.bf16.msrb.mxu3 %v3056_v55  ;;  %v4593_v54 = vld [vmem:[#allocation5 + $0x4a4] sm:$0xf]  ;;  %v3613_v55 = vld [vmem:[#allocation5 + $0x4b0] sm:$0xf0]  ;;  %v3488_v59 = vor.u32 %v4561_v51, %v3485_v52 }
  0x53   :  { %1378 = vmatpush.bf16.msrb.mxu0 %v3548_v2  ;;  %v4625_v61 = vld [vmem:[#allocation5 + $0x5a4] sm:$0xf]  ;;  %v3741_v62 = vld [vmem:[#allocation5 + $0x5b0] sm:$0xf0]  ;;  %v3616_v0 = vor.u32 %v4593_v54, %v3613_v55 }
  0x54   :  { %1391 = vmatpush.bf16.msrb.mxu1 %v3676_v6  ;;  %v4525_v63 = vld [vmem:[#allocation5 + $0x284] sm:$0xf]  ;;  %v3469_v3 = vld [vmem:[#allocation5 + $0x390] sm:$0xf0]  ;;  %v3744_v6 = vor.u32 %v4625_v61, %v3741_v62  ;;  %v3139_v61 = vld [vmem:[#allocation5 + $0xe8] sm:$0xf] }
  0x55   :  { %1429 = vmatpush.bf16.msra.mxu2 %v3184_v1  ;;  %v3341_v1 = vld [vmem:[#allocation5 + $0x290] sm:$0xf0]  ;;  %v4557_v2 = vld [vmem:[#allocation5 + $0x384] sm:$0xf]  ;;  %v4476_v62 = vld [vmem:[#allocation5 + $0xf4] sm:$0xf0] }
  0x56   :  { %1417 = vmatpush.bf16.msrb.mxu3 %v3040_v7  ;;  %v4589_v4 = vld [vmem:[#allocation5 + $0x484] sm:$0xf]  ;;  %v3597_v5 = vld [vmem:[#allocation5 + $0x490] sm:$0xf0]  ;;  %v3344_v7 = vor.u32 %v4525_v63, %v3341_v1  ;;  %v3472_v8 = vor.u32 %v4557_v2, %v3469_v3  ;;  %v3395_v2 = vld [vmem:[#allocation5 + $0x2e8] sm:$0xf] }
  0x57   :  { %1379 = vmatpush.bf16.msrb.mxu0 %v3532_v20  ;;  %v4621_v10 = vld [vmem:[#allocation5 + $0x584] sm:$0xf]  ;;  %v3725_v11 = vld [vmem:[#allocation5 + $0x590] sm:$0xf0]  ;;  %v3600_v13 = vor.u32 %v4589_v4, %v3597_v5  ;;  %v4540_v3 = vld [vmem:[#allocation5 + $0x2f4] sm:$0xf0] }
  0x58   :  { %1392 = vmatpush.bf16.msrb.mxu1 %v3660_v24  ;;  %v4521_v12 = vld [vmem:[#allocation5 + $0x264] sm:$0xf]  ;;  %v3325_v14 = vld [vmem:[#allocation5 + $0x270] sm:$0xf0] }
  0x59   :  { %1430 = vmatpush.bf16.msra.mxu2 %v3168_v19  ;;  %v4553_v15 = vld [vmem:[#allocation5 + $0x364] sm:$0xf]  ;;  %v3453_v16 = vld [vmem:[#allocation5 + $0x370] sm:$0xf0]  ;;  %v3728_v19 = vor.u32 %v4621_v10, %v3725_v11  ;;  %v3328_v20 = vor.u32 %v4521_v12, %v3325_v14  ;;  %v3140_v10 = vor.u32 %v4476_v62, %v3139_v61  ;;  %v3523_v11 = vld [vmem:[#allocation5 + $0x3e8] sm:$0xf] }
  0x5a   :  { %1418 = vmatpush.bf16.msrb.mxu3 %v3024_v25  ;;  %1380 = vmatmul.bf16.vlgmr.msrb.gmra.mxu0 %v5035_v34  ;;  %v4585_v17 = vld [vmem:[#allocation5 + $0x464] sm:$0xf]  ;;  %v3581_v18 = vld [vmem:[#allocation5 + $0x470] sm:$0xf0]  ;;  %v3456_v21 = vor.u32 %v4553_v15, %v3453_v16  ;;  %v4572_v12 = vld [vmem:[#allocation5 + $0x3f4] sm:$0xf0]  ;;  %v3396_v16 = vor.u32 %v4540_v3, %v3395_v2 }
  0x5b   :  { %1437 = vmatpush.bf16.msra.mxu0 %v3392_v28  ;;  %1393 = vmatmul.bf16.vlgmr.msrb.gmra.mxu1 %v5037_v39  ;;  %v4617_v22 = vld [vmem:[#allocation5 + $0x564] sm:$0xf]  ;;  %v3709_v23 = vld [vmem:[#allocation5 + $0x570] sm:$0xf0]  ;;  %v3584_v25 = vor.u32 %v4585_v17, %v3581_v18  ;;  %v3267_v14 = vld [vmem:[#allocation5 + $0x1e8] sm:$0xf] }
  0x5c   :  { %1450 = vmatpush.bf16.msra.mxu1 %v3520_v29  ;;  %v4517_v24 = vld [vmem:[#allocation5 + $0x244] sm:$0xf]  ;;  %v3309_v26 = vld [vmem:[#allocation5 + $0x250] sm:$0xf0]  ;;  %v3712_v31 = vor.u32 %v4617_v22, %v3709_v23  ;;  %v4508_v15 = vld [vmem:[#allocation5 + $0x1f4] sm:$0xf0] }
  0x5d   :  { %1431 = vmatpush.bf16.msra.mxu2 %v3152_v38  ;;  %1419 = vmatmul.bf16.vlgmr.msrb.gmra.mxu3 %v5021_v57  ;;  %v4549_v27 = vld [vmem:[#allocation5 + $0x344] sm:$0xf]  ;;  %v3437_v28 = vld [vmem:[#allocation5 + $0x350] sm:$0xf0]  ;;  %v3312_v32 = vor.u32 %v4517_v24, %v3309_v26  ;;  %v3123_v18 = vld [vmem:[#allocation5 + $0xc8] sm:$0xf]  ;;  %v3268_v23 = vor.u32 %v4508_v15, %v3267_v14 }
  0x5e   :  { %1463 = vmatpush.bf16.msra.mxu3 %v3648_v33  ;;  %v4581_v29 = vld [vmem:[#allocation5 + $0x444] sm:$0xf]  ;;  %v3565_v30 = vld [vmem:[#allocation5 + $0x450] sm:$0xf0]  ;;  %v3440_v33 = vor.u32 %v4549_v27, %v3437_v28  ;;  %v4536_v22 = vld [vmem:[#allocation5 + $0x2d4] sm:$0xf0] }
  0x5f   :  { %1438 = vmatpush.bf16.msra.mxu0 %v3376_v43  ;;  %v4613_v35 = vld [vmem:[#allocation5 + $0x544] sm:$0xf]  ;;  %v3693_v36 = vld [vmem:[#allocation5 + $0x550] sm:$0xf0]  ;;  %v3568_v38 = vor.u32 %v4581_v29, %v3565_v30  ;;  %v3507_v24 = vld [vmem:[#allocation5 + $0x3c8] sm:$0xf] }
  0x60   :  { %1451 = vmatpush.bf16.msra.mxu1 %v3504_v44  ;;  %1432 = vmatmul.bf16.vlgmr.msra.gmra.mxu2 %v5027_v9  ;;  %v4513_v37 = vld [vmem:[#allocation5 + $0x224] sm:$0xf]  ;;  %v3293_v40 = vld [vmem:[#allocation5 + $0x230] sm:$0xf0]  ;;  %v3696_v45 = vor.u32 %v4613_v35, %v3693_v36  ;;  %v3251_v27 = vld [vmem:[#allocation5 + $0x1c8] sm:$0xf] }
  0x61   :  { %1476 = vmatpush.bf16.msrb.mxu2 %v3776_v42  ;;  %v4545_v41 = vld [vmem:[#allocation5 + $0x324] sm:$0xf]  ;;  %v3421_v42 = vld [vmem:[#allocation5 + $0x330] sm:$0xf0]  ;;  %v4504_v28 = vld [vmem:[#allocation5 + $0x1d4] sm:$0xf0] }
  0x62   :  { %1464 = vmatpush.bf16.msra.mxu3 %v3632_v49  ;;  %v4577_v43 = vld [vmem:[#allocation5 + $0x424] sm:$0xf]  ;;  %v3549_v44 = vld [vmem:[#allocation5 + $0x430] sm:$0xf0]  ;;  %v3296_v49 = vor.u32 %v4513_v37, %v3293_v40  ;;  %v3424_v50 = vor.u32 %v4545_v41, %v3421_v42  ;;  %v3107_v30 = vld [vmem:[#allocation5 + $0xa8] sm:$0xf]  ;;  %v3252_v36 = vor.u32 %v4504_v28, %v3251_v27 }
  0x63   :  { %1439 = vmatpush.bf16.msra.mxu0 %v3360_v58  ;;  %v4609_v46 = vld [vmem:[#allocation5 + $0x524] sm:$0xf]  ;;  %v3677_v47 = vld [vmem:[#allocation5 + $0x530] sm:$0xf0]  ;;  %v3552_v55 = vor.u32 %v4577_v43, %v3549_v44  ;;  %v4532_v35 = vld [vmem:[#allocation5 + $0x2b4] sm:$0xf0] }
  0x64   :  { %1452 = vmatpush.bf16.msra.mxu1 %v3488_v59  ;;  %v4509_v51 = vld [vmem:[#allocation5 + $0x204] sm:$0xf]  ;;  %v3277_v52 = vld [vmem:[#allocation5 + $0x210] sm:$0xf0]  ;;  %v3491_v37 = vld [vmem:[#allocation5 + $0x3a8] sm:$0xf] }
  0x65   :  { %1477 = vmatpush.bf16.msrb.mxu2 %v3760_v56  ;;  %v4541_v54 = vld [vmem:[#allocation5 + $0x304] sm:$0xf]  ;;  %v3405_v56 = vld [vmem:[#allocation5 + $0x310] sm:$0xf0]  ;;  %v3280_v4 = vor.u32 %v4509_v51, %v3277_v52  ;;  %v3235_v41 = vld [vmem:[#allocation5 + $0x1a8] sm:$0xf] }
  0x66   :  { %1465 = vmatpush.bf16.msra.mxu3 %v3616_v0  ;;  %v4573_v58 = vld [vmem:[#allocation5 + $0x404] sm:$0xf]  ;;  %v3533_v59 = vld [vmem:[#allocation5 + $0x410] sm:$0xf0]  ;;  %v3680_v0 = vor.u32 %v4609_v46, %v3677_v47  ;;  %v3408_v5 = vor.u32 %v4541_v54, %v3405_v56  ;;  %v4500_v42 = vld [vmem:[#allocation5 + $0x1b4] sm:$0xf0] }
  0x67   :  { %1440 = vmatpush.bf16.msra.mxu0 %v3344_v7  ;;  %v4637_v63 = vld [vmem:[#allocation5 + $0x604] sm:$0xf]  ;;  %v3789_v1 = vld [vmem:[#allocation5 + $0x610] sm:$0xf0]  ;;  %v3091_v44 = vld [vmem:[#allocation5 + $0x88] sm:$0xf] }
  0x68   :  { %1453 = vmatpush.bf16.msra.mxu1 %v3472_v8  ;;  %v3661_v7 = vld [vmem:[#allocation5 + $0x510] sm:$0xf0]  ;;  %v3536_v8 = vor.u32 %v4573_v58, %v3533_v59  ;;  %v3347_v47 = vld [vmem:[#allocation5 + $0x288] sm:$0xf]  ;;  %v4560_v52 = vld [vmem:[#allocation5 + $0x394] sm:$0xf0] }
  0x69   :  { %1478 = vmatpush.bf16.msrb.mxu2 %v3744_v6  ;;  %v4605_v6 = vld [vmem:[#allocation5 + $0x504] sm:$0xf]  ;;  %v3475_v51 = vld [vmem:[#allocation5 + $0x388] sm:$0xf]  ;;  %v4496_v56 = vld [vmem:[#allocation5 + $0x194] sm:$0xf0] }
  0x6a   :  { %1466 = vmatpush.bf16.msra.mxu3 %v3600_v13  ;;  %v3792_v13 = vor.u32 %v4637_v63, %v3789_v1  ;;  %v3664_v17 = vor.u32 %v4605_v6, %v3661_v7  ;;  %v3075_v59 = vld [vmem:[#allocation5 + $0x68] sm:$0xf]  ;;  %v4460_v61 = vld [vmem:[#allocation5 + $0x74] sm:$0xf0]  ;;  %v3476_v62 = vor.u32 %v4560_v52, %v3475_v51  ;;  %v4474_v51 = vld [vmem:[#allocation5 + $0xec] sm:$0xf] }
  0x6b   :  { %1441 = vmatpush.bf16.msra.mxu0 %v3328_v20  ;;  %v3524_v20 = vor.u32 %v4572_v12, %v3523_v11  ;;  %v3331_v63 = vld [vmem:[#allocation5 + $0x268] sm:$0xf]  ;;  %v4556_v3 = vld [vmem:[#allocation5 + $0x374] sm:$0xf0]  ;;  %v3141_v52 = vld [vmem:[#allocation5 + $0xf8] sm:$0xf0] }
  0x6c   :  { %1454 = vmatpush.bf16.msra.mxu1 %v3456_v21  ;;  %v3379_v21 = vld [vmem:[#allocation5 + $0x2c8] sm:$0xf]  ;;  %v4492_v6 = vld [vmem:[#allocation5 + $0x174] sm:$0xf0] }
  0x6d   :  { %1479 = vmatpush.bf16.msrb.mxu2 %v3728_v19  ;;  %v4472_v19 = vld [vmem:[#allocation5 + $0xd4] sm:$0xf0]  ;;  %v3380_v29 = vor.u32 %v4536_v22, %v3379_v21  ;;  %v3459_v2 = vld [vmem:[#allocation5 + $0x368] sm:$0xf] }
  0x6e   :  { %1467 = vmatpush.bf16.msra.mxu3 %v3584_v25  ;;  %v4568_v25 = vld [vmem:[#allocation5 + $0x3d4] sm:$0xf0]  ;;  %v3124_v26 = vor.u32 %v4472_v19, %v3123_v18  ;;  %v3460_v11 = vor.u32 %v4556_v3, %v3459_v2  ;;  %v3315_v12 = vld [vmem:[#allocation5 + $0x248] sm:$0xf]  ;;  %v3144_v3 = vor.u32 %v4474_v51, %v3141_v52 }
  0x6f   :  { %1442 = vmatpush.bf16.msra.mxu0 %v3312_v32  ;;  %v3508_v32 = vor.u32 %v4568_v25, %v3507_v24  ;;  %v3443_v15 = vld [vmem:[#allocation5 + $0x348] sm:$0xf]  ;;  %v4488_v19 = vld [vmem:[#allocation5 + $0x154] sm:$0xf0] }
  0x70   :  { %1455 = vmatpush.bf16.msra.mxu1 %v3440_v33  ;;  %v3363_v33 = vld [vmem:[#allocation5 + $0x2a8] sm:$0xf]  ;;  %v4452_v22 = vld [vmem:[#allocation5 + $0x34] sm:$0xf0] }
  0x71   :  { %1480 = vmatpush.bf16.msrb.mxu2 %v3712_v31  ;;  %v4468_v31 = vld [vmem:[#allocation5 + $0xb4] sm:$0xf0]  ;;  %v3364_v43 = vor.u32 %v4532_v35, %v3363_v33  ;;  %v3187_v18 = vld [vmem:[#allocation5 + $0x148] sm:$0xf] }
  0x72   :  { %1468 = vmatpush.bf16.msra.mxu3 %v3568_v38  ;;  %v4564_v38 = vld [vmem:[#allocation5 + $0x3b4] sm:$0xf0]  ;;  %v3108_v40 = vor.u32 %v4468_v31, %v3107_v30  ;;  %v3043_v21 = vld [vmem:[#allocation5 + $0x28] sm:$0xf] }
  0x73   :  { %1443 = vmatpush.bf16.msra.mxu0 %v3296_v49  ;;  %v3492_v46 = vor.u32 %v4564_v38, %v3491_v37  ;;  %v4528_v49 = vld [vmem:[#allocation5 + $0x294] sm:$0xf0]  ;;  %v3299_v24 = vld [vmem:[#allocation5 + $0x228] sm:$0xf] }
  0x74   :  { %1456 = vmatpush.bf16.msra.mxu1 %v3424_v50  ;;  %v3236_v50 = vor.u32 %v4500_v42, %v3235_v41  ;;  %v3348_v58 = vor.u32 %v4528_v49, %v3347_v47  ;;  %v4516_v25 = vld [vmem:[#allocation5 + $0x234] sm:$0xf0]  ;;  %v3427_v27 = vld [vmem:[#allocation5 + $0x328] sm:$0xf] }
  0x75   :  { %1481 = vmatpush.bf16.msrb.mxu2 %v3696_v45  ;;  %v4464_v45 = vld [vmem:[#allocation5 + $0x94] sm:$0xf0]  ;;  %v3171_v30 = vld [vmem:[#allocation5 + $0x128] sm:$0xf]  ;;  %v3300_v33 = vor.u32 %v4516_v25, %v3299_v24 }
  0x76   :  { %1469 = vmatpush.bf16.msra.mxu3 %v3552_v55  ;;  %v3092_v54 = vor.u32 %v4464_v45, %v3091_v44  ;;  %v3219_v55 = vld [vmem:[#allocation5 + $0x188] sm:$0xf]  ;;  %v4548_v28 = vld [vmem:[#allocation5 + $0x334] sm:$0xf0] }
  0x77   :  { %1444 = vmatpush.bf16.msra.mxu0 %v3280_v4  ;;  %v3220_v1 = vor.u32 %v4496_v56, %v3219_v55  ;;  %v3076_v4 = vor.u32 %v4460_v61, %v3075_v59  ;;  %v4484_v31 = vld [vmem:[#allocation5 + $0x134] sm:$0xf0]  ;;  %v3428_v38 = vor.u32 %v4548_v28, %v3427_v27  ;;  %v3283_v41 = vld [vmem:[#allocation5 + $0x208] sm:$0xf]  ;;  %v3237_v27 = vld [vmem:[#allocation5 + $0x1b8] sm:$0xf0] }
  0x78   :  { %1457 = vmatpush.bf16.msra.mxu1 %v3408_v5  ;;  %v3203_v5 = vld [vmem:[#allocation5 + $0x168] sm:$0xf]  ;;  %v4448_v35 = vld [vmem:[#allocation5 + $0x14] sm:$0xf0]  ;;  %v3172_v44 = vor.u32 %v4484_v31, %v3171_v30  ;;  %v4462_v30 = vld [vmem:[#allocation5 + $0x8c] sm:$0xf] }
  0x79   :  { %1482 = vmatpush.bf16.msrb.mxu2 %v3680_v0  ;;  %v4524_v0 = vld [vmem:[#allocation5 + $0x274] sm:$0xf0]  ;;  %v3204_v14 = vor.u32 %v4492_v6, %v3203_v5  ;;  %v3779_v56 = vld [vmem:[#allocation5 + $0x5e8] sm:$0xf]  ;;  %v4470_v5 = vld [vmem:[#allocation5 + $0xcc] sm:$0xf] }
  0x7a   :  { %1470 = vmatpush.bf16.msra.mxu3 %v3536_v8  ;;  %1445 = vmatmul.bf16.vlgmr.msra.gmra.mxu0 %v5019_v53  ;;  %v3332_v7 = vor.u32 %v4524_v0, %v3331_v63  ;;  %v3059_v8 = vld [vmem:[#allocation5 + $0x48] sm:$0xf]  ;;  %v4604_v37 = vld [vmem:[#allocation5 + $0x4f4] sm:$0xf0]  ;;  %v4506_v0 = vld [vmem:[#allocation5 + $0x1ec] sm:$0xf] }
  0x7b   :  { %1528 = vmatpush.bf16.msrb.mxu0 %v3396_v16  ;;  %1458 = vmatmul.bf16.vlgmr.msra.gmra.mxu1 %v5023_v60  ;;  %v4552_v16 = vld [vmem:[#allocation5 + $0x354] sm:$0xf0]  ;;  %v3635_v59 = vld [vmem:[#allocation5 + $0x4c8] sm:$0xf]  ;;  %v3125_v6 = vld [vmem:[#allocation5 + $0xd8] sm:$0xf0] }
  0x7c   :  { %1502 = vmatpush.bf16.msrb.mxu1 %v3140_v10  ;;  %v4456_v10 = vld [vmem:[#allocation5 + $0x54] sm:$0xf0]  ;;  %v3603_v24 = vld [vmem:[#allocation5 + $0x488] sm:$0xf]  ;;  %v3093_v31 = vld [vmem:[#allocation5 + $0x98] sm:$0xf0] }
  0x7d   :  { %1483 = vmatpush.bf16.msrb.mxu2 %v3664_v17  ;;  %1471 = vmatmul.bf16.vlgmr.msra.gmra.mxu3 %v5035_v34  ;;  %v3060_v17 = vor.u32 %v4456_v10, %v3059_v8  ;;  %v4512_v42 = vld [vmem:[#allocation5 + $0x214] sm:$0xf0]  ;;  %v3763_v10 = vld [vmem:[#allocation5 + $0x5c8] sm:$0xf] }
  0x7e   :  { %1496 = vmatpush.bf16.msrb.mxu3 %v3792_v13  ;;  %v4520_v13 = vld [vmem:[#allocation5 + $0x254] sm:$0xf0]  ;;  %v3284_v55 = vor.u32 %v4512_v42, %v3283_v41  ;;  %v3221_v41 = vld [vmem:[#allocation5 + $0x198] sm:$0xf0]  ;;  %v3096_v42 = vor.u32 %v4462_v30, %v3093_v31  ;;  %v3571_v51 = vld [vmem:[#allocation5 + $0x448] sm:$0xf] }
  0x7f   :  { %1529 = vmatpush.bf16.msrb.mxu0 %v3380_v29  ;;  %v3044_v29 = vor.u32 %v4452_v22, %v3043_v21  ;;  %v4544_v45 = vld [vmem:[#allocation5 + $0x314] sm:$0xf0]  ;;  %v3747_v22 = vld [vmem:[#allocation5 + $0x5a8] sm:$0xf]  ;;  %v3525_v30 = vld [vmem:[#allocation5 + $0x3f8] sm:$0xf0] }
  0x80   :  { %1503 = vmatpush.bf16.msrb.mxu1 %v3124_v26  ;;  %1484 = vmatmul.bf16.vlgmr.msrb.gmra.mxu2 %v5037_v39  ;;  %v3188_v26 = vor.u32 %v4488_v19, %v3187_v18  ;;  %v4640_v47 = vld [vmem:[#allocation5 + $0x614] sm:$0xf0]  ;;  %v4466_v18 = vld [vmem:[#allocation5 + $0xac] sm:$0xf]  ;;  %v3109_v19 = vld [vmem:[#allocation5 + $0xb8] sm:$0xf0] }
  0x81   :  { %1541 = vmatpush.bf16.msra.mxu2 %v3524_v20  ;;  %v3316_v20 = vor.u32 %v4520_v13, %v3315_v12  ;;  %v3619_v12 = vld [vmem:[#allocation5 + $0x4a8] sm:$0xf]  ;;  %v4596_v13 = vld [vmem:[#allocation5 + $0x4b4] sm:$0xf0]  ;;  %v3112_v28 = vor.u32 %v4466_v18, %v3109_v19  ;;  %v3173_v18 = vld [vmem:[#allocation5 + $0x138] sm:$0xf0] }
  0x82   :  { %1515 = vmatpush.bf16.msra.mxu3 %v3268_v23  ;;  %v3444_v23 = vor.u32 %v4552_v16, %v3443_v15  ;;  %v3253_v15 = vld [vmem:[#allocation5 + $0x1d8] sm:$0xf0]  ;;  %v3128_v16 = vor.u32 %v4470_v5, %v3125_v6  ;;  %v4592_v25 = vld [vmem:[#allocation5 + $0x494] sm:$0xf0] }
  0x83   :  { %1530 = vmatpush.bf16.msrb.mxu0 %v3364_v43  ;;  %v3411_v43 = vld [vmem:[#allocation5 + $0x308] sm:$0xf]  ;;  %v4584_v52 = vld [vmem:[#allocation5 + $0x454] sm:$0xf0]  ;;  %v3189_v5 = vld [vmem:[#allocation5 + $0x158] sm:$0xf0] }
  0x84   :  { %1504 = vmatpush.bf16.msrb.mxu1 %v3108_v40  ;;  %v3155_v40 = vld [vmem:[#allocation5 + $0x108] sm:$0xf]  ;;  %v3412_v61 = vor.u32 %v4544_v45, %v3411_v43  ;;  %v3077_v45 = vld [vmem:[#allocation5 + $0x78] sm:$0xf0] }
  0x85   :  { %1542 = vmatpush.bf16.msra.mxu2 %v3508_v32  ;;  %v3027_v32 = vld [vmem:[#allocation5 + $0x8] sm:$0xf] }
  0x86   :  { %1516 = vmatpush.bf16.msra.mxu3 %v3252_v36  ;;  %v3651_v36 = vld [vmem:[#allocation5 + $0x4e8] sm:$0xf]  ;;  %v3028_v49 = vor.u32 %v4448_v35, %v3027_v32  ;;  %v3604_v32 = vor.u32 %v4592_v25, %v3603_v24  ;;  %v4446_v24 = vld [vmem:[#allocation5 + $0xc] sm:$0xf]  ;;  %v3029_v25 = vld [vmem:[#allocation5 + $0x18] sm:$0xf0] }
  0x87   :  { %1531 = vmatpush.bf16.msrb.mxu0 %v3348_v58  ;;  %v4636_v58 = vld [vmem:[#allocation5 + $0x5f4] sm:$0xf0]  ;;  %v3731_v35 = vld [vmem:[#allocation5 + $0x588] sm:$0xf] }
  0x88   :  { %1505 = vmatpush.bf16.msrb.mxu1 %v3092_v54  ;;  %v3652_v54 = vor.u32 %v4604_v37, %v3651_v36  ;;  %v4624_v36 = vld [vmem:[#allocation5 + $0x594] sm:$0xf0]  ;;  %v3587_v37 = vld [vmem:[#allocation5 + $0x468] sm:$0xf] }
  0x89   :  { %1543 = vmatpush.bf16.msra.mxu2 %v3492_v46  ;;  %v3795_v46 = vld [vmem:[#allocation5 + $0x608] sm:$0xf]  ;;  %v3732_v43 = vor.u32 %v4624_v36, %v3731_v35  ;;  %v4534_v35 = vld [vmem:[#allocation5 + $0x2cc] sm:$0xf]  ;;  %v3032_v36 = vor.u32 %v4446_v24, %v3029_v25 }
  0x8a   :  { %1517 = vmatpush.bf16.msra.mxu3 %v3236_v50  ;;  %v4480_v50 = vld [vmem:[#allocation5 + $0x114] sm:$0xf0]  ;;  %v3796_v63 = vor.u32 %v4640_v47, %v3795_v46  ;;  %v4554_v24 = vld [vmem:[#allocation5 + $0x36c] sm:$0xf] }
  0x8b   :  { %1532 = vmatpush.bf16.msrb.mxu0 %v3332_v7  ;;  %v3156_v2 = vor.u32 %v4480_v50, %v3155_v40  ;;  %v4494_v40 = vld [vmem:[#allocation5 + $0x18c] sm:$0xf]  ;;  %v4620_v50 = vld [vmem:[#allocation5 + $0x574] sm:$0xf0] }
  0x8c   :  { %1506 = vmatpush.bf16.msrb.mxu1 %v3076_v4  ;;  %v3780_v4 = vor.u32 %v4636_v58, %v3779_v56  ;;  %v3224_v47 = vor.u32 %v4494_v40, %v3221_v41  ;;  %v3157_v40 = vld [vmem:[#allocation5 + $0x118] sm:$0xf0] }
  0x8d   :  { %1544 = vmatpush.bf16.msra.mxu2 %v3476_v62  ;;  %3802 = vmatmul.msk.bf16.vlgmr.msrb.gmra.mxu3 %vm1316_vm0, %v5031_v48  ;;  %v4600_v62 = vld [vmem:[#allocation5 + $0x4d4] sm:$0xf0] }
  0x8e   :  { %1518 = vmatpush.bf16.msra.mxu3 %v3220_v1  ;;  %v3269_v1 = vld [vmem:[#allocation5 + $0x1f8] sm:$0xf0]  ;;  %v3636_v7 = vor.u32 %v4600_v62, %v3635_v59  ;;  %v4454_v59 = vld [vmem:[#allocation5 + $0x4c] sm:$0xf]  ;;  %v3572_v62 = vor.u32 %v4584_v52, %v3571_v51 }
  0x8f   :  { %1533 = vmatpush.bf16.msrb.mxu0 %v3316_v20  ;;  %v3272_v8 = vor.u32 %v4506_v0, %v3269_v1  ;;  %v3620_v20 = vor.u32 %v4596_v13, %v3619_v12  ;;  %v3699_v0 = vld [vmem:[#allocation5 + $0x548] sm:$0xf]  ;;  %v4616_v1 = vld [vmem:[#allocation5 + $0x554] sm:$0xf0]  ;;  %v4598_v51 = vld [vmem:[#allocation5 + $0x4cc] sm:$0xf] }
  0x90   :  { %1507 = vmatpush.bf16.msrb.mxu1 %v3060_v17  ;;  %v3683_v13 = vld [vmem:[#allocation5 + $0x528] sm:$0xf]  ;;  %v3637_v52 = vld [vmem:[#allocation5 + $0x4d8] sm:$0xf0] }
  0x91   :  { %1545 = vmatpush.bf16.msra.mxu2 %v3460_v11  ;;  %v4632_v11 = vld [vmem:[#allocation5 + $0x5d4] sm:$0xf0] }
  0x92   :  { %1519 = vmatpush.bf16.msra.mxu3 %v3204_v14  ;;  %v4502_v14 = vld [vmem:[#allocation5 + $0x1cc] sm:$0xf]  ;;  %v3764_v17 = vor.u32 %v4632_v11, %v3763_v10  ;;  %v3045_v10 = vld [vmem:[#allocation5 + $0x38] sm:$0xf0] }
  0x93   :  { %1534 = vmatpush.bf16.msrb.mxu0 %v3300_v33  ;;  %v3256_v21 = vor.u32 %v4502_v14, %v3253_v15  ;;  %v4612_v14 = vld [vmem:[#allocation5 + $0x534] sm:$0xf0]  ;;  %v3539_v15 = vld [vmem:[#allocation5 + $0x408] sm:$0xf] }
  0x94   :  { %1508 = vmatpush.bf16.msrb.mxu1 %v3044_v29 }
  0x95   :  { %1546 = vmatpush.bf16.msra.mxu2 %v3444_v23  ;;  %v4628_v23 = vld [vmem:[#allocation5 + $0x5b4] sm:$0xf0] }
  0x96   :  { %1520 = vmatpush.bf16.msra.mxu3 %v3188_v26  ;;  %v4498_v26 = vld [vmem:[#allocation5 + $0x1ac] sm:$0xf]  ;;  %v3748_v29 = vor.u32 %v4628_v23, %v3747_v22  ;;  %v3684_v22 = vor.u32 %v4612_v14, %v3683_v13  ;;  %v3667_v23 = vld [vmem:[#allocation5 + $0x508] sm:$0xf]  ;;  %v3477_v14 = vld [vmem:[#allocation5 + $0x398] sm:$0xf0] }
  0x97   :  { %1535 = vmatpush.bf16.msrb.mxu0 %v3284_v55  ;;  %v3240_v33 = vor.u32 %v4498_v26, %v3237_v27  ;;  %v3205_v55 = vld [vmem:[#allocation5 + $0x178] sm:$0xf0] }
  0x98   :  { %1509 = vmatpush.bf16.msrb.mxu1 %v3028_v49  ;;  %v3715_v49 = vld [vmem:[#allocation5 + $0x568] sm:$0xf] }
  0x99   :  { %1547 = vmatpush.bf16.msra.mxu2 %v3428_v38  ;;  %v4588_v38 = vld [vmem:[#allocation5 + $0x474] sm:$0xf0]  ;;  %v3716_v58 = vor.u32 %v4620_v50, %v3715_v49  ;;  %v3509_v50 = vld [vmem:[#allocation5 + $0x3d8] sm:$0xf0] }
  0x9a   :  { %1521 = vmatpush.bf16.msra.mxu3 %v3172_v44  ;;  %1536 = vmatmul.bf16.vlgmr.msrb.gmra.mxu0 %v5019_v53  ;;  %v4458_v44 = vld [vmem:[#allocation5 + $0x6c] sm:$0xf]  ;;  %v3588_v46 = vor.u32 %v4588_v38, %v3587_v37  ;;  %v3381_v37 = vld [vmem:[#allocation5 + $0x2d8] sm:$0xf0] }
  0x9b   :  { %1587 = vmatpush.bf16.msra.mxu0 %v3796_v63  ;;  %1510 = vmatmul.bf16.vlgmr.msrb.gmra.mxu1 %v5021_v57  ;;  %v3080_v56 = vor.u32 %v4458_v44, %v3077_v45  ;;  %v4478_v38 = vld [vmem:[#allocation5 + $0x10c] sm:$0xf] }
  0x9c   :  { %1554 = vmatpush.bf16.msra.mxu1 %v3652_v54  ;;  %v4490_v54 = vld [vmem:[#allocation5 + $0x16c] sm:$0xf]  ;;  %v3160_v49 = vor.u32 %v4478_v38, %v3157_v40 }
  0x9d   :  { %1548 = vmatpush.bf16.msra.mxu2 %v3412_v61  ;;  %v3061_v61 = vld [vmem:[#allocation5 + $0x58] sm:$0xf0]  ;;  %v3208_v63 = vor.u32 %v4490_v54, %v3205_v55  ;;  %v4530_v55 = vld [vmem:[#allocation5 + $0x2ac] sm:$0xf] }
  0x9e   :  { %1522 = vmatpush.bf16.msra.mxu3 %v3156_v2  ;;  %v3555_v2 = vld [vmem:[#allocation5 + $0x428] sm:$0xf]  ;;  %v3064_v6 = vor.u32 %v4454_v59, %v3061_v61  ;;  %v3765_v59 = vld [vmem:[#allocation5 + $0x5d8] sm:$0xf0]  ;;  %v4550_v38 = vld [vmem:[#allocation5 + $0x34c] sm:$0xf] }
  0x9f   :  { %1606 = vmatpush.bf16.msrb.mxu0 %v3272_v8  ;;  %v4450_v8 = vld [vmem:[#allocation5 + $0x2c] sm:$0xf] }
  0xa0   :  { %1555 = vmatpush.bf16.msra.mxu1 %v3636_v7  ;;  %1549 = vmatmul.bf16.vlgmr.msra.gmra.mxu2 %v5023_v60  ;;  %v3700_v7 = vor.u32 %v4616_v1, %v3699_v0  ;;  %v3048_v19 = vor.u32 %v4450_v8, %v3045_v10  ;;  %v3493_v1 = vld [vmem:[#allocation5 + $0x3b8] sm:$0xf0] }
  0xa1   :  { %1593 = vmatpush.bf16.msrb.mxu2 %v3144_v3  ;;  %1523 = vmatmul.bf16.vlgmr.msra.gmra.mxu3 %v5027_v9  ;;  %v4580_v3 = vld [vmem:[#allocation5 + $0x434] sm:$0xf0]  ;;  %v3749_v8 = vld [vmem:[#allocation5 + $0x5b8] sm:$0xf0] }
  0xa2   :  { %1567 = vmatpush.bf16.msrb.mxu3 %v3780_v4  ;;  %v4486_v4 = vld [vmem:[#allocation5 + $0x14c] sm:$0xf]  ;;  %v3556_v11 = vor.u32 %v4580_v3, %v3555_v2  ;;  %v3621_v3 = vld [vmem:[#allocation5 + $0x4b8] sm:$0xf0] }
  0xa3   :  { %1607 = vmatpush.bf16.msrb.mxu0 %v3256_v21  ;;  %v3192_v12 = vor.u32 %v4486_v4, %v3189_v5  ;;  %v3397_v21 = vld [vmem:[#allocation5 + $0x2f8] sm:$0xf0]  ;;  %v4594_v2 = vld [vmem:[#allocation5 + $0x4ac] sm:$0xf] }
  0xa4   :  { %1556 = vmatpush.bf16.msra.mxu1 %v3620_v20  ;;  %v4538_v20 = vld [vmem:[#allocation5 + $0x2ec] sm:$0xf] }
  0xa5   :  { %1594 = vmatpush.bf16.msrb.mxu2 %v3128_v16  ;;  %v4576_v16 = vld [vmem:[#allocation5 + $0x414] sm:$0xf0]  ;;  %v3400_v31 = vor.u32 %v4538_v20, %v3397_v21  ;;  %v4526_v5 = vld [vmem:[#allocation5 + $0x28c] sm:$0xf]  ;;  %v3733_v21 = vld [vmem:[#allocation5 + $0x598] sm:$0xf0] }
  0xa6   :  { %1568 = vmatpush.bf16.msrb.mxu3 %v3764_v17  ;;  %v4482_v17 = vld [vmem:[#allocation5 + $0x12c] sm:$0xf]  ;;  %v3540_v26 = vor.u32 %v4576_v16, %v3539_v15  ;;  %v3605_v16 = vld [vmem:[#allocation5 + $0x498] sm:$0xf0] }
  0xa7   :  { %1608 = vmatpush.bf16.msrb.mxu0 %v3240_v33  ;;  %v3176_v27 = vor.u32 %v4482_v17, %v3173_v18  ;;  %v3653_v33 = vld [vmem:[#allocation5 + $0x4f8] sm:$0xf0]  ;;  %v4590_v15 = vld [vmem:[#allocation5 + $0x48c] sm:$0xf] }
  0xa8   :  { %1557 = vmatpush.bf16.msra.mxu1 %v3604_v32  ;;  %v4602_v32 = vld [vmem:[#allocation5 + $0x4ec] sm:$0xf] }
  0xa9   :  { %1595 = vmatpush.bf16.msrb.mxu2 %v3112_v28  ;;  %v4608_v28 = vld [vmem:[#allocation5 + $0x514] sm:$0xf0]  ;;  %v3656_v45 = vor.u32 %v4602_v32, %v3653_v33  ;;  %v4522_v18 = vld [vmem:[#allocation5 + $0x26c] sm:$0xf]  ;;  %v3717_v33 = vld [vmem:[#allocation5 + $0x578] sm:$0xf0] }
  0xaa   :  { %1569 = vmatpush.bf16.msrb.mxu3 %v3748_v29  ;;  %3803 = vmatmul.msk.bf16.vlgmr.msra.gmra.mxu0 %vm1316_vm0, %v5031_v48  ;;  %v4570_v29 = vld [vmem:[#allocation5 + $0x3ec] sm:$0xf]  ;;  %v3668_v41 = vor.u32 %v4608_v28, %v3667_v23  ;;  %v3608_v23 = vor.u32 %v4590_v15, %v3605_v16  ;;  %v3589_v28 = vld [vmem:[#allocation5 + $0x478] sm:$0xf0] }
  0xab   :  { %1609 = vmatpush.bf16.msrb.mxu0 %v3224_v47  ;;  %v3528_v44 = vor.u32 %v4570_v29, %v3525_v30  ;;  %v3384_v47 = vor.u32 %v4534_v35, %v3381_v37  ;;  %v4518_v30 = vld [vmem:[#allocation5 + $0x24c] sm:$0xf]  ;;  %v3541_v16 = vld [vmem:[#allocation5 + $0x418] sm:$0xf0] }
  0xac   :  { %1558 = vmatpush.bf16.msra.mxu1 %v3588_v46  ;;  %v4566_v46 = vld [vmem:[#allocation5 + $0x3cc] sm:$0xf] }
  0xad   :  { %1596 = vmatpush.bf16.msrb.mxu2 %v3096_v42  ;;  %v4634_v42 = vld [vmem:[#allocation5 + $0x5ec] sm:$0xf]  ;;  %v3512_v61 = vor.u32 %v4566_v46, %v3509_v50 }
  0xae   :  { %1570 = vmatpush.bf16.msrb.mxu3 %v3732_v43  ;;  %v3781_v43 = vld [vmem:[#allocation5 + $0x5f8] sm:$0xf0]  ;;  %v4618_v32 = vld [vmem:[#allocation5 + $0x56c] sm:$0xf] }
  0xaf   :  { %1610 = vmatpush.bf16.msrb.mxu0 %v3208_v63  ;;  %v3784_v54 = vor.u32 %v4634_v42, %v3781_v43  ;;  %v4562_v63 = vld [vmem:[#allocation5 + $0x3ac] sm:$0xf]  ;;  %v3445_v42 = vld [vmem:[#allocation5 + $0x358] sm:$0xf0] }
  0xb0   :  { %1559 = vmatpush.bf16.msra.mxu1 %v3572_v62  ;;  %v3640_v62 = vor.u32 %v4598_v51, %v3637_v52  ;;  %v3496_v10 = vor.u32 %v4562_v63, %v3493_v1  ;;  %v4582_v43 = vld [vmem:[#allocation5 + $0x44c] sm:$0xf]  ;;  %v3701_v51 = vld [vmem:[#allocation5 + $0x558] sm:$0xf0]  ;;  %v5067_v52 = vld [vmem:[#allocation10] sm:$0x77] }
  0xb1   :  { %1597 = vmatpush.bf16.msrb.mxu2 %v3080_v56  ;;  %v3365_v56 = vld [vmem:[#allocation5 + $0x2b8] sm:$0xf0]  ;;  %v4514_v46 = vld [vmem:[#allocation5 + $0x22c] sm:$0xf] }
  0xb2   :  { %1571 = vmatpush.bf16.msrb.mxu3 %v3716_v58  ;;  %v4630_v58 = vld [vmem:[#allocation5 + $0x5cc] sm:$0xf]  ;;  %v3368_v0 = vor.u32 %v4530_v55, %v3365_v56  ;;  %v3285_v1 = vld [vmem:[#allocation5 + $0x218] sm:$0xf0] }
  0xb3   :  { %1611 = vmatpush.bf16.msrb.mxu0 %v3192_v12  ;;  %v3768_v4 = vor.u32 %v4630_v58, %v3765_v59  ;;  %v4558_v12 = vld [vmem:[#allocation5 + $0x38c] sm:$0xf]  ;;  %v3429_v59 = vld [vmem:[#allocation5 + $0x338] sm:$0xf0] }
  0xb4   :  { %1560 = vmatpush.bf16.msra.mxu1 %v3556_v11  ;;  %v3624_v11 = vor.u32 %v4594_v2, %v3621_v3  ;;  %v4614_v50 = vld [vmem:[#allocation5 + $0x54c] sm:$0xf] }
  0xb5   :  { %1598 = vmatpush.bf16.msrb.mxu2 %v3064_v6  ;;  %v3349_v6 = vld [vmem:[#allocation5 + $0x298] sm:$0xf0]  ;;  %v4546_v56 = vld [vmem:[#allocation5 + $0x32c] sm:$0xf]  ;;  %v3704_v63 = vor.u32 %v4614_v50, %v3701_v51  ;;  %v4659_v50 = vld [vmem:[#allocation7 + $0x8c] sm:$0xf0] }
  0xb6   :  { %1572 = vmatpush.bf16.msrb.mxu3 %v3700_v7  ;;  %v4626_v7 = vld [vmem:[#allocation5 + $0x5ac] sm:$0xf]  ;;  %v3352_v13 = vor.u32 %v4526_v5, %v3349_v6  ;;  %v5059_v20 = vpop.f32.mrf.mxu0  ;;  %v3797_v6 = vld [vmem:[#allocation5 + $0x618] sm:$0xf0] }
  0xb7   :  { %1612 = vmatpush.bf16.msrb.mxu0 %v3176_v27  ;;  %v3752_v17 = vor.u32 %v4626_v7, %v3749_v8  ;;  %v4586_v27 = vld [vmem:[#allocation5 + $0x46c] sm:$0xf]  ;;  %v5061_v29 = vpop.f32.mrf.mxu1  ;;  %v300_v7 = vperm.slane %v5067_v52, 0 }
  0xb8   :  { %1561 = vmatpush.bf16.msra.mxu1 %v3540_v26  ;;  %v3461_v26 = vld [vmem:[#allocation5 + $0x378] sm:$0xf0]  ;;  %v3592_v37 = vor.u32 %v4586_v27, %v3589_v28  ;;  %v4610_v2 = vld [vmem:[#allocation5 + $0x52c] sm:$0xf] }
  0xb9   :  { %1599 = vmatpush.bf16.msrb.mxu2 %v3048_v19  ;;  %v3333_v19 = vld [vmem:[#allocation5 + $0x278] sm:$0xf0]  ;;  %v4638_v5 = vld [vmem:[#allocation5 + $0x60c] sm:$0xf] }
  0xba   :  { %1573 = vmatpush.bf16.msrb.mxu3 %v3684_v22  ;;  %v3480_v22 = vor.u32 %v4558_v12, %v3477_v14  ;;  %v3336_v25 = vor.u32 %v4522_v18, %v3333_v19  ;;  %v4542_v12 = vld [vmem:[#allocation5 + $0x30c] sm:$0xf]  ;;  %v3413_v14 = vld [vmem:[#allocation5 + $0x318] sm:$0xf0]  ;;  %v3919_v19 = vld [vmem:[#allocation7 + $0xe0] sm:$0xf] }
  0xbb   :  { %1562 = vmatmul.bf16.vlgmr.msra.gmra.mxu1 %v5035_v34  ;;  %1613 = vmatpush.bf16.msrb.mxu0 %v3160_v49  ;;  %v4574_v15 = vld [vmem:[#allocation5 + $0x40c] sm:$0xf]  ;;  %v3416_v27 = vor.u32 %v4542_v12, %v3413_v14  ;;  %v4647_v14 = vld [vmem:[#allocation7 + $0x2c] sm:$0xf0] }
  0xbc   :  { %1619 = vmatpush.bf16.msrb.mxu1 %v3400_v31  ;;  %v3317_v31 = vld [vmem:[#allocation5 + $0x258] sm:$0xf0]  ;;  %v3544_v28 = vor.u32 %v4574_v15, %v3541_v16  ;;  %v3951_v16 = vld [vmem:[#allocation7 + $0x120] sm:$0xf] }
  0xbd   :  { %1600 = vmatpush.bf16.msrb.mxu2 %v3032_v36  ;;  %v3464_v36 = vor.u32 %v4554_v24, %v3461_v26  ;;  %v3320_v40 = vor.u32 %v4518_v30, %v3317_v31  ;;  %v4047_v24 = vld [vmem:[#allocation7 + $0x1e0] sm:$0xf]  ;;  %v308_v26 = vperm.slane %v300_v7, 0  ;;  %v4683_v7 = vld [vmem:[#allocation7 + $0x14c] sm:$0xf0] }
  0xbe   :  { %1574 = vmatpush.bf16.msrb.mxu3 %v3668_v41  ;;  %1614 = vmatmul.bf16.vlgmr.msrb.gmra.mxu0 %v5027_v9  ;;  %v5063_v35 = vpop.f32.mrf.mxu2  ;;  %v1331_v49 = vpop.f32.mrf.mxu0  ;;  %v3903_v31 = vld [vmem:[#allocation7 + $0xc0] sm:$0xf] }
  0xbf   :  { %1658 = vmatpush.bf16.msra.mxu0 %v3784_v54  ;;  %v3448_v54 = vor.u32 %v4550_v38, %v3445_v42  ;;  %v1344_v3 = vpop.f32.mrf.mxu1  ;;  %v1330_v38 = vadd.f32 %v5059_v20, %v308_v26  ;;  %v3871_v20 = vld [vmem:[#allocation7 + $0x80] sm:$0xf]  ;;  %v3921_v26 = vld [vmem:[#allocation7 + $0xf0] sm:$0xf0] }
  0xc0   :  { %1620 = vmatpush.bf16.msrb.mxu1 %v3384_v47  ;;  %1601 = vmatmul.bf16.vlgmr.msrb.gmra.mxu2 %v5021_v57  ;;  %v4622_v57 = vld [vmem:[#allocation5 + $0x58c] sm:$0xf]  ;;  %v5065_v41 = vpop.f32.mrf.mxu3  ;;  %v3301_v47 = vld [vmem:[#allocation5 + $0x238] sm:$0xf0]  ;;  %v3839_v3 = vld [vmem:[#allocation7 + $0x40] sm:$0xf] }
  0xc1   :  { %1645 = vmatpush.bf16.msra.mxu2 %v3656_v45  ;;  %1575 = vmatmul.bf16.vlgmr.msrb.gmra.mxu3 %v5037_v39  ;;  %v3736_v9 = vor.u32 %v4622_v57, %v3733_v21  ;;  %v3720_v45 = vor.u32 %v4618_v32, %v3717_v33  ;;  %v3304_v58 = vor.u32 %v4514_v46, %v3301_v47  ;;  %v4671_v57 = vld [vmem:[#allocation7 + $0xec] sm:$0xf0]  ;;  %v4606_v21 = vld [vmem:[#allocation5 + $0x50c] sm:$0xf]  ;;  %v4015_v46 = vld [vmem:[#allocation7 + $0x1a0] sm:$0xf] }
  0xc2   :  { %1632 = vmatpush.bf16.msra.mxu3 %v3528_v44  ;;  %v3573_v44 = vld [vmem:[#allocation5 + $0x458] sm:$0xf0]  ;;  %v4667_v32 = vld [vmem:[#allocation7 + $0xcc] sm:$0xf0]  ;;  %v1343_v49 = vadd.f32 %v5061_v29, %v1330_v38  ;;  %v3855_v29 = vld [vmem:[#allocation7 + $0x60] sm:$0xf] }
  0xc3   :  { %1659 = vmatpush.bf16.msra.mxu0 %v3768_v4  ;;  %v3576_v55 = vor.u32 %v4582_v43, %v3573_v44  ;;  %v3685_v4 = vld [vmem:[#allocation5 + $0x538] sm:$0xf0]  ;;  %v3904_v42 = vor.u32 %v4667_v32, %v3903_v31  ;;  %v3887_v43 = vld [vmem:[#allocation7 + $0xa0] sm:$0xf]  ;;  %v4663_v44 = vld [vmem:[#allocation7 + $0xac] sm:$0xf0] }
  0xc4   :  { %1621 = vmatpush.bf16.msrb.mxu1 %v3368_v0  ;;  %v4510_v0 = vld [vmem:[#allocation5 + $0x20c] sm:$0xf]  ;;  %v3688_v18 = vor.u32 %v4610_v2, %v3685_v4  ;;  %v4695_v47 = vld [vmem:[#allocation7 + $0x1ac] sm:$0xf0]  ;;  %v4049_v31 = vld [vmem:[#allocation7 + $0x1f0] sm:$0xf0] }
  0xc5   :  { %1646 = vmatpush.bf16.msra.mxu2 %v3640_v62  ;;  %v3557_v62 = vld [vmem:[#allocation5 + $0x438] sm:$0xf0]  ;;  %v4016_v51 = vor.u32 %v4695_v47, %v4015_v46  ;;  %v4651_v4 = vld [vmem:[#allocation7 + $0x4c] sm:$0xf0]  ;;  %v4697_v47 = vld [vmem:[#allocation7 + $0x1c4] sm:$0xf] }
  0xc6   :  { %1633 = vmatpush.bf16.msra.mxu3 %v3512_v61  ;;  %v4578_v61 = vld [vmem:[#allocation5 + $0x42c] sm:$0xf]  ;;  %v1357_v8 = vpop.f32.mrf.mxu2 }
  0xc7   :  { %1660 = vmatpush.bf16.msra.mxu0 %v3752_v17 }
  0xc8   :  { %1622 = vmatpush.bf16.msrb.mxu1 %v3352_v13  ;;  %v3288_v13 = vor.u32 %v4510_v0, %v3285_v1  ;;  %v1370_v17 = vpop.f32.mrf.mxu3 }
  0xc9   :  { %1647 = vmatpush.bf16.msra.mxu2 %v3624_v11  ;;  %v3560_v11 = vor.u32 %v4578_v61, %v3557_v62  ;;  %v3872_v61 = vor.u32 %v4659_v50, %v3871_v20  ;;  %v4655_v62 = vld [vmem:[#allocation7 + $0x6c] sm:$0xf0]  ;;  %v4143_v50 = vld [vmem:[#allocation7 + $0x2a0] sm:$0xf] }
  0xca   :  { %1634 = vmatpush.bf16.msra.mxu3 %v3496_v10  ;;  %v3432_v10 = vor.u32 %v4546_v56, %v3429_v59  ;;  %v4691_v56 = vld [vmem:[#allocation7 + $0x18c] sm:$0xf0]  ;;  %v3856_v1 = vor.u32 %v4655_v62, %v3855_v29  ;;  %v4127_v29 = vld [vmem:[#allocation7 + $0x280] sm:$0xf] }
  0xcb   :  { %1661 = vmatpush.bf16.msra.mxu0 %v3736_v9  ;;  %v3920_v9 = vor.u32 %v4671_v57, %v3919_v19  ;;  %v4679_v17 = vld [vmem:[#allocation7 + $0x12c] sm:$0xf0]  ;;  %v3807_v19 = vld [vmem:[#allocation7] sm:$0xf] }
  0xcc   :  { %1623 = vmatpush.bf16.msrb.mxu1 %v3336_v25  ;;  %v4703_v25 = vld [vmem:[#allocation7 + $0x1ec] sm:$0xf0] }
  0xcd   :  { %1648 = vmatpush.bf16.msra.mxu2 %v3608_v23  ;;  %v3669_v23 = vld [vmem:[#allocation5 + $0x518] sm:$0xf0]  ;;  %v4048_v33 = vor.u32 %v4703_v25, %v4047_v24  ;;  %v4643_v57 = vld [vmem:[#allocation7 + $0xc] sm:$0xf0] }
  0xce   :  { %1635 = vmatpush.bf16.msra.mxu3 %v3480_v22  ;;  %v3800_v22 = vor.u32 %v4638_v5, %v3797_v6  ;;  %v3672_v30 = vor.u32 %v4606_v21, %v3669_v23  ;;  %v3967_v6 = vld [vmem:[#allocation7 + $0x140] sm:$0xf]  ;;  %v4735_v24 = vld [vmem:[#allocation7 + $0x2ec] sm:$0xf0]  ;;  %v3808_v32 = vor.u32 %v4643_v57, %v3807_v19  ;;  %v4649_v57 = vld [vmem:[#allocation7 + $0x44] sm:$0xf] }
  0xcf   :  { %1662 = vmatpush.bf16.msra.mxu0 %v3720_v45  ;;  %v3968_v15 = vor.u32 %v4683_v7, %v3967_v6  ;;  %v4175_v23 = vld [vmem:[#allocation7 + $0x2e0] sm:$0xf]  ;;  %v4723_v62 = vld [vmem:[#allocation7 + $0x28c] sm:$0xf0] }
  0xd0   :  { %1624 = vmatpush.bf16.msrb.mxu1 %v3320_v40  ;;  %v5072_v40 = vpop.f32.mrf.mxu2  ;;  %v4111_v6 = vld [vmem:[#allocation7 + $0x260] sm:$0xf]  ;;  %v4719_v7 = vld [vmem:[#allocation7 + $0x26c] sm:$0xf0] }
  0xd1   :  { %1649 = vmatpush.bf16.msra.mxu2 %v3592_v37  ;;  %v4699_v37 = vld [vmem:[#allocation7 + $0x1cc] sm:$0xf0] }
  0xd2   :  { %1636 = vmatpush.bf16.msra.mxu3 %v3464_v36  ;;  %v4031_v36 = vld [vmem:[#allocation7 + $0x1c0] sm:$0xf] }
  0xd3   :  { %1663 = vmatpush.bf16.msra.mxu0 %v3704_v63  ;;  %v4032_v45 = vor.u32 %v4699_v37, %v4031_v36  ;;  %v3983_v63 = vld [vmem:[#allocation7 + $0x160] sm:$0xf] }
  0xd4   :  { %1625 = vmatpush.bf16.msrb.mxu1 %v3304_v58  ;;  %v1356_v58 = vadd.f32 %v5063_v35, %v1343_v49  ;;  %v4033_v49 = vld [vmem:[#allocation7 + $0x1d0] sm:$0xf0] }
  0xd5   :  { %1650 = vmatpush.bf16.msra.mxu2 %v3576_v55  ;;  %v3999_v55 = vld [vmem:[#allocation7 + $0x180] sm:$0xf] }
  0xd6   :  { %1637 = vmatpush.bf16.msra.mxu3 %v3448_v54  ;;  %v1369_v0 = vadd.f32 %v5065_v41, %v1356_v58 }
  0xd7   :  { %1664 = vmatpush.bf16.msra.mxu0 %v3688_v18  ;;  %v1381_v54 = vpop.f32.mrf.mxu0 }
  0xd8   :  { %1626 = vmatpush.bf16.msrb.mxu1 %v3288_v13  ;;  %v1409_v59 = vpop.f32.mrf.mxu2  ;;  %v1382_v2 = vadd.f32 %v1381_v54, %v1369_v0  ;;  %v3823_v13 = vld [vmem:[#allocation7 + $0x20] sm:$0xf]  ;;  %v4661_v54 = vld [vmem:[#allocation7 + $0xa4] sm:$0xf] }
  0xd9   :  { %1651 = vmatpush.bf16.msra.mxu2 %v3560_v11  ;;  %v3840_v11 = vor.u32 %v4651_v4, %v3839_v3  ;;  %v3824_v18 = vor.u32 %v4647_v14, %v3823_v13  ;;  %v4017_v59 = vld [vmem:[#allocation7 + $0x1b0] sm:$0xf0]  ;;  %v4685_v14 = vld [vmem:[#allocation7 + $0x164] sm:$0xf] }
  0xda   :  { %1638 = vmatpush.bf16.msra.mxu3 %v3432_v10  ;;  %v4001_v3 = vld [vmem:[#allocation7 + $0x190] sm:$0xf0] }
  0xdb   :  { %1627 = vmatmul.bf16.vlgmr.msrb.gmra.mxu1 %v5019_v53  ;;  %1665 = vmatpush.bf16.msra.mxu0 %v3672_v30  ;;  %v3888_v53 = vor.u32 %v4663_v44, %v3887_v43  ;;  %v4701_v30 = vld [vmem:[#allocation7 + $0x1e4] sm:$0xf]  ;;  %v3905_v44 = vld [vmem:[#allocation7 + $0xd0] sm:$0xf0] }
  0xdc   :  { %1678 = vmatpush.bf16.msra.mxu1 %v3800_v22  ;;  %v3952_v22 = vor.u32 %v4679_v17, %v3951_v16  ;;  %v4665_v43 = vld [vmem:[#allocation7 + $0xc4] sm:$0xf]  ;;  %v4095_v17 = vld [vmem:[#allocation7 + $0x240] sm:$0xf] }
  0xdd   :  { %1652 = vmatpush.bf16.msra.mxu2 %v3544_v28  ;;  %v4675_v28 = vld [vmem:[#allocation7 + $0x10c] sm:$0xf0]  ;;  %v3908_v20 = vor.u32 %v4665_v43, %v3905_v44  ;;  %v4641_v43 = vld [vmem:[#allocation7 + $0x4] sm:$0xf] }
  0xde   :  { %1639 = vmatpush.bf16.msra.mxu3 %v3416_v27  ;;  %1666 = vmatmul.bf16.vlgmr.msra.gmra.mxu0 %v5037_v39  ;;  %v4687_v39 = vld [vmem:[#allocation7 + $0x16c] sm:$0xf0]  ;;  %v3935_v27 = vld [vmem:[#allocation7 + $0x100] sm:$0xf] }
  0xdf   :  { %v3984_v5 = vor.u32 %v4687_v39, %v3983_v63  ;;  %v1383_v8 = vpop.f32.mrf.mxu0  ;;  %v3936_v38 = vor.u32 %v4675_v28, %v3935_v27  ;;  %v4657_v63 = vld [vmem:[#allocation7 + $0x84] sm:$0xf]  ;;  %v3873_v39 = vld [vmem:[#allocation7 + $0x90] sm:$0xf0] }
  0xe0   :  { %2485 = vmatpush.bf16.msrb.mxu1 %v4048_v33  ;;  %1653 = vmatmul.bf16.vlgmr.msra.gmra.mxu2 %v5035_v34  ;;  %v4000_v34 = vor.u32 %v4691_v56, %v3999_v55  ;;  %v5080_v35 = vpop.f32.mrf.mxu3  ;;  %v3889_v55 = vld [vmem:[#allocation7 + $0xb0] sm:$0xf0]  ;;  %v4036_v56 = vor.u32 %v4697_v47, %v4033_v49  ;;  %v4707_v47 = vld [vmem:[#allocation7 + $0x20c] sm:$0xf0]  ;;  %v3927_v49 = vld [vmem:[#allocation7 + $0xe8] sm:$0xf] }
  0xe1   :  { %1640 = vmatmul.bf16.vlgmr.msra.gmra.mxu3 %v5023_v60  ;;  %v1394_v60 = vpop.f32.mrf.mxu1 }
  0xe2   :  { %2472 = vmatpush.bf16.msrb.mxu3 %v3920_v9  ;;  %v1395_v41 = vadd.f32 %v1394_v60, %v1382_v2  ;;  %v4176_v9 = vor.u32 %v4735_v24, %v4175_v23  ;;  %v4693_v60 = vld [vmem:[#allocation7 + $0x1a4] sm:$0xf] }
  0xe3   :  { %v5084_v12 = vpop.f32.mrf.mxu2  ;;  %v4020_v0 = vor.u32 %v4693_v60, %v4017_v59  ;;  %v4689_v2 = vld [vmem:[#allocation7 + $0x184] sm:$0xf] }
  0xe4   :  { %2486 = vmatpush.bf16.msrb.mxu1 %v4032_v45  ;;  %v1408_v21 = vadd.f32 %v5072_v40, %v1395_v41  ;;  %2498 = vmatpush.bf16.msrb.mxu2 %v4176_v9  ;;  %v4159_v40 = vld [vmem:[#allocation7 + $0x2c0] sm:$0xf]  ;;  %v4052_v45 = vor.u32 %v4701_v30, %v4049_v31  ;;  %v3857_v41 = vld [vmem:[#allocation7 + $0x70] sm:$0xf0]  ;;  %v4004_v13 = vor.u32 %v4689_v2, %v4001_v3  ;;  %v4681_v24 = vld [vmem:[#allocation7 + $0x144] sm:$0xf] }
  0xe5   :  { %v4079_v9 = vld [vmem:[#allocation7 + $0x220] sm:$0xf]  ;;  %v4711_v30 = vld [vmem:[#allocation7 + $0x22c] sm:$0xf0]  ;;  %v4668_v2 = vld [vmem:[#allocation7 + $0xd4] sm:$0xf0] }
  0xe6   :  { %2473 = vmatpush.bf16.msrb.mxu3 %v3904_v42  ;;  %v1684_v36 = vmax.f32 %v1408_v21, 0.0  ;;  %v4731_v42 = vld [vmem:[#allocation7 + $0x2cc] sm:$0xf0]  ;;  %v3841_v21 = vld [vmem:[#allocation7 + $0x50] sm:$0xf0] }
  0xe7   :  { %v4160_v46 = vor.u32 %v4731_v42, %v4159_v40  ;;  %v3844_v28 = vor.u32 %v4649_v57, %v3841_v21  ;;  %v3953_v40 = vld [vmem:[#allocation7 + $0x130] sm:$0xf0]  ;;  %v3879_v21 = vld [vmem:[#allocation7 + $0x88] sm:$0xf] }
  0xe8   :  { %2487 = vmatpush.bf16.msrb.mxu1 %v4016_v51  ;;  %v1422_v25 = vpop.f32.mrf.mxu3  ;;  %v4727_v51 = vld [vmem:[#allocation7 + $0x2ac] sm:$0xf0] }
  0xe9   :  { %v1396_v10 = vpop.f32.mrf.mxu1  ;;  %2499 = vmatpush.bf16.msrb.mxu2 %v4160_v46  ;;  %v4144_v58 = vor.u32 %v4727_v51, %v4143_v50  ;;  %v3969_v25 = vld [vmem:[#allocation7 + $0x150] sm:$0xf0]  ;;  %v4063_v46 = vld [vmem:[#allocation7 + $0x200] sm:$0xf]  ;;  %v4733_v50 = vld [vmem:[#allocation7 + $0x2e4] sm:$0xf] }
  0xea   :  { %2474 = vmatpush.bf16.msrb.mxu3 %v3888_v53  ;;  %v5087_v53 = vpack.c.bf16 %v1684_v36, %v1684_v36  ;;  %v4177_v51 = vld [vmem:[#allocation7 + $0x2f0] sm:$0xf0] }
  0xeb   :  { %3804 = vmatmul.msk.bf16.vlgmr.msra.gmra.mxu1 %vm1316_vm0, %v5031_v48  ;;  %v4669_v48 = vld [vmem:[#allocation7 + $0xe4] sm:$0xf]  ;;  %v1435_v33 = vpop.f32.mrf.mxu2  ;;  %v4180_v60 = vor.u32 %v4733_v50, %v4177_v51 }
  0xec   :  { %2488 = vmatpush.bf16.msrb.mxu1 %v4000_v34  ;;  %v3924_v37 = vor.u32 %v4669_v48, %v3921_v26  ;;  %v301_v34 = vperm.slane %v5067_v52, 4  ;;  %v4112_v52 = vor.u32 %v4719_v7, %v4111_v6  ;;  %v3825_v33 = vld [vmem:[#allocation7 + $0x30] sm:$0xf0] }
  0xed   :  { %2500 = vmatpush.bf16.msrb.mxu2 %v4144_v58  ;;  %v3937_v58 = vld [vmem:[#allocation7 + $0x110] sm:$0xf0] }
  0xee   :  { %2475 = vmatpush.bf16.msrb.mxu3 %v3872_v61  ;;  %v3892_v61 = vor.u32 %v4661_v54, %v3889_v55  ;;  %v309_v8 = vperm.slane %v301_v34, 0  ;;  %v4672_v55 = vld [vmem:[#allocation7 + $0xf4] sm:$0xf0] }
  0xef   :  { %v3928_v34 = vor.u32 %v4672_v55, %v3927_v49  ;;  %v4023_v49 = vld [vmem:[#allocation7 + $0x1a8] sm:$0xf]  ;;  %v4713_v55 = vld [vmem:[#allocation7 + $0x244] sm:$0xf] }
  0xf0   :  { %2489 = vmatpush.bf16.msrb.mxu1 %v3984_v5  ;;  %v3876_v5 = vor.u32 %v4657_v63, %v3873_v39  ;;  %v1421_v19 = vadd.f32 %v5080_v35, %v309_v8  ;;  %v3972_v35 = vor.u32 %v4681_v24, %v3969_v25  ;;  %v3911_v63 = vld [vmem:[#allocation7 + $0xc8] sm:$0xf]  ;;  %v4721_v24 = vld [vmem:[#allocation7 + $0x284] sm:$0xf] }
  0xf1   :  { %v3912_v8 = vor.u32 %v4668_v2, %v3911_v63  ;;  %v4081_v2 = vld [vmem:[#allocation7 + $0x230] sm:$0xf0] }
  0xf2   :  { %2476 = vmatpush.bf16.msrb.mxu3 %v3856_v1  ;;  %v4128_v1 = vor.u32 %v4723_v62, %v4127_v29  ;;  %v1434_v31 = vadd.f32 %v5084_v12, %v1421_v19  ;;  %v4064_v12 = vor.u32 %v4707_v47, %v4063_v46  ;;  %v4704_v19 = vld [vmem:[#allocation7 + $0x1f4] sm:$0xf0]  ;;  %v4255_v46 = vld [vmem:[#allocation7 + $0x380] sm:$0xf]  ;;  %v4755_v47 = vld [vmem:[#allocation7 + $0x38c] sm:$0xf0] }
  0xf4   :  { %2490 = vmatpush.bf16.msrb.mxu1 %v3968_v15  ;;  %2501 = vmatpush.bf16.msrb.mxu2 %v4128_v1  ;;  %v3985_v15 = vld [vmem:[#allocation7 + $0x170] sm:$0xf0] }
  0xf5   :  { %v3988_v48 = vor.u32 %v4685_v14, %v3985_v15  ;;  %v4161_v1 = vld [vmem:[#allocation7 + $0x2d0] sm:$0xf0]  ;;  %v4287_v15 = vld [vmem:[#allocation7 + $0x3c0] sm:$0xf] }
  0xf6   :  { %2477 = vmatpush.bf16.msrb.mxu3 %v3840_v11  ;;  %v4653_v11 = vld [vmem:[#allocation7 + $0x64] sm:$0xf] }
  0xf7   :  { %v1446_v4 = vpop.f32.mrf.mxu0  ;;  %v3860_v16 = vor.u32 %v4653_v11, %v3857_v41  ;;  %v4725_v11 = vld [vmem:[#allocation7 + $0x2a4] sm:$0xf]  ;;  %v4145_v41 = vld [vmem:[#allocation7 + $0x2b0] sm:$0xf0] }
  0xf8   :  { %2491 = vmatpush.bf16.msrb.mxu1 %v3952_v22  ;;  %v1459_v10 = vpop.f32.mrf.mxu1  ;;  %2502 = vmatpush.bf16.msrb.mxu2 %v4112_v52  ;;  %v1447_v42 = vadd.f32 %v1446_v4, %v1434_v31  ;;  %v4303_v4 = vld [vmem:[#allocation7 + $0x3e0] sm:$0xf]  ;;  %v4664_v52 = vld [vmem:[#allocation7 + $0xb4] sm:$0xf0]  ;;  %v4148_v14 = vor.u32 %v4725_v11, %v4145_v41  ;;  %v3991_v11 = vld [vmem:[#allocation7 + $0x168] sm:$0xf] }
  0xf9   :  { %v4700_v31 = vld [vmem:[#allocation7 + $0x1d4] sm:$0xf0] }
  0xfa   :  { %2478 = vmatpush.bf16.msrb.mxu3 %v3824_v18  ;;  %v4715_v18 = vld [vmem:[#allocation7 + $0x24c] sm:$0xf0]  ;;  %v1460_v59 = vadd.f32 %v1459_v10, %v1447_v42  ;;  %v3895_v10 = vld [vmem:[#allocation7 + $0xa8] sm:$0xf]  ;;  %v4688_v41 = vld [vmem:[#allocation7 + $0x174] sm:$0xf0] }
  0xfb   :  { %v4096_v22 = vor.u32 %v4715_v18, %v4095_v17  ;;  %v4055_v18 = vld [vmem:[#allocation7 + $0x1e8] sm:$0xf] }
  0xfc   :  { %2492 = vmatpush.bf16.msrb.mxu1 %v3936_v38  ;;  %v4677_v38 = vld [vmem:[#allocation7 + $0x124] sm:$0xf]  ;;  %v4056_v25 = vor.u32 %v4704_v19, %v4055_v18  ;;  %v4644_v18 = vld [vmem:[#allocation7 + $0x14] sm:$0xf0] }
  0xfd   :  { %2503 = vmatpush.bf16.msrb.mxu2 %v4096_v22  ;;  %v3896_v22 = vor.u32 %v4664_v52, %v3895_v10  ;;  %v4747_v10 = vld [vmem:[#allocation7 + $0x34c] sm:$0xf0]  ;;  %v5103_v52 = vld [vmem:[#allocation10 + $0x8] sm:$0x77]  ;;  %v4705_v19 = vld [vmem:[#allocation7 + $0x204] sm:$0xf] }
  0xfe   :  { %2479 = vmatpush.bf16.msrb.mxu3 %v3808_v32  ;;  %v4645_v32 = vld [vmem:[#allocation7 + $0x24] sm:$0xf] }
  0xff   :  { %v1448_v26 = vpop.f32.mrf.mxu0  ;;  %v3828_v44 = vor.u32 %v4645_v32, %v3825_v33 }
 0x100   :  { %2537 = vmatpush.bf16.msra.mxu1 %v4052_v45  ;;  %v1472_v23 = vpop.f32.mrf.mxu3  ;;  %v1461_v36 = vpop.f32.mrf.mxu1  ;;  %v3809_v45 = vld [vmem:[#allocation7 + $0x10] sm:$0xf0] }
 0x101   :  { %2480 = vmatmul.bf16.vlgmr.msrb.gmra.mxu3 %v5087_v53  ;;  %v1473_v62 = vadd.f32 %v1472_v23, %v1460_v59  ;;  %v4660_v23 = vld [vmem:[#allocation7 + $0x94] sm:$0xf0]  ;;  %v4129_v26 = vld [vmem:[#allocation7 + $0x290] sm:$0xf0]  ;;  %v3863_v36 = vld [vmem:[#allocation7 + $0x68] sm:$0xf] }
 0x102   :  { %2524 = vmatpush.bf16.msra.mxu3 %v3924_v37  ;;  %v4080_v37 = vor.u32 %v4711_v30, %v4079_v9  ;;  %v4039_v30 = vld [vmem:[#allocation7 + $0x1c8] sm:$0xf]  ;;  %v4132_v32 = vor.u32 %v4721_v24, %v4129_v26  ;;  %v4743_v24 = vld [vmem:[#allocation7 + $0x32c] sm:$0xf0]  ;;  %v4670_v26 = vld [vmem:[#allocation7 + $0xec] sm:$0xf] }
 0x103   :  { %v1485_v27 = vpop.f32.mrf.mxu2 }
 0x104   :  { %2538 = vmatpush.bf16.msra.mxu1 %v4036_v56  ;;  %2504 = vmatpush.bf16.msrb.mxu2 %v4080_v37  ;;  %v4673_v56 = vld [vmem:[#allocation7 + $0x104] sm:$0xf]  ;;  %v1486_v7 = vadd.f32 %v1485_v27, %v1473_v62  ;;  %v4271_v27 = vld [vmem:[#allocation7 + $0x3a0] sm:$0xf]  ;;  %v4007_v62 = vld [vmem:[#allocation7 + $0x188] sm:$0xf] }
 0x105   :  { %v3940_v39 = vor.u32 %v4673_v56, %v3937_v58  ;;  %v4717_v37 = vld [vmem:[#allocation7 + $0x264] sm:$0xf]  ;;  %v4097_v56 = vld [vmem:[#allocation7 + $0x250] sm:$0xf0] }
 0x106   :  { %2525 = vmatpush.bf16.msra.mxu3 %v3908_v20  ;;  %v3956_v20 = vor.u32 %v4677_v38, %v3953_v40  ;;  %v4113_v38 = vld [vmem:[#allocation7 + $0x270] sm:$0xf0]  ;;  %v4100_v59 = vor.u32 %v4713_v55, %v4097_v56  ;;  %v3943_v56 = vld [vmem:[#allocation7 + $0x108] sm:$0xf] }
 0x108   :  { %2539 = vmatpush.bf16.msra.mxu1 %v4020_v0  ;;  %v1474_v54 = vpop.f32.mrf.mxu3  ;;  %2505 = vmatpush.bf16.msrb.mxu2 %v4064_v12  ;;  %v4729_v0 = vld [vmem:[#allocation7 + $0x2c4] sm:$0xf]  ;;  %v4256_v12 = vor.u32 %v4755_v47, %v4255_v46 }
 0x109   :  { %v4164_v3 = vor.u32 %v4729_v0, %v4161_v1  ;;  %v3847_v54 = vld [vmem:[#allocation7 + $0x48] sm:$0xf]  ;;  %v4709_v1 = vld [vmem:[#allocation7 + $0x224] sm:$0xf] }
 0x10a   :  { %2526 = vmatpush.bf16.msra.mxu3 %v3892_v61  ;;  %v3812_v61 = vor.u32 %v4641_v43, %v3809_v45  ;;  %v4040_v43 = vor.u32 %v4700_v31, %v4039_v30  ;;  %v4116_v45 = vor.u32 %v4717_v37, %v4113_v38  ;;  %v3831_v0 = vld [vmem:[#allocation7 + $0x28] sm:$0xf]  ;;  %v302_v30 = vperm.slane %v5103_v52, 0  ;;  %v4666_v37 = vld [vmem:[#allocation7 + $0xcc] sm:$0xf] }
 0x10b   :  { %v1487_v29 = vpop.f32.mrf.mxu2  ;;  %v4765_v47 = vld [vmem:[#allocation7 + $0x3e4] sm:$0xf] }
 0x10c   :  { %2540 = vmatpush.bf16.msra.mxu1 %v4004_v13  ;;  %2550 = vmatpush.bf16.msra.mxu2 %v4180_v60  ;;  %v4652_v60 = vld [vmem:[#allocation7 + $0x54] sm:$0xf0]  ;;  %v4751_v29 = vld [vmem:[#allocation7 + $0x36c] sm:$0xf0] }
 0x10e   :  { %2527 = vmatpush.bf16.msra.mxu3 %v3876_v5  ;;  %v4767_v5 = vld [vmem:[#allocation7 + $0x3ec] sm:$0xf0] }
 0x10f   :  { %v4304_v6 = vor.u32 %v4767_v5, %v4303_v4 }
 0x110   :  { %2541 = vmatpush.bf16.msra.mxu1 %v3988_v48  ;;  %2551 = vmatpush.bf16.msra.mxu2 %v4164_v3  ;;  %v1498_v13 = vpop.f32.mrf.mxu3 }
 0x111   :  { %2511 = vmatpush.bf16.msrb.mxu0 %v4304_v6  ;;  %v1499_v17 = vadd.f32 %v1498_v13, %v1486_v7  ;;  %v4648_v6 = vld [vmem:[#allocation7 + $0x34] sm:$0xf0]  ;;  %v4084_v7 = vor.u32 %v4709_v1, %v4081_v2  ;;  %v4658_v2 = vld [vmem:[#allocation7 + $0x8c] sm:$0xf] }
 0x112   :  { %2528 = vmatpush.bf16.msra.mxu3 %v3860_v16  ;;  %v4763_v16 = vld [vmem:[#allocation7 + $0x3cc] sm:$0xf0] }
 0x113   :  { %v4288_v57 = vor.u32 %v4763_v16, %v4287_v15  ;;  %v1685_v48 = vmax.f32 %v1499_v17, 0.0  ;;  %v3815_v15 = vld [vmem:[#allocation7 + $0x8] sm:$0xf]  ;;  %v3832_v17 = vor.u32 %v4648_v6, %v3831_v0  ;;  %v3881_v6 = vld [vmem:[#allocation7 + $0x98] sm:$0xf0] }
 0x114   :  { %2542 = vmatpush.bf16.msra.mxu1 %v3972_v35  ;;  %2552 = vmatpush.bf16.msra.mxu2 %v4148_v14  ;;  %v3880_v35 = vor.u32 %v4660_v23, %v3879_v21  ;;  %v3992_v21 = vor.u32 %v4688_v41, %v3991_v11  ;;  %v4207_v23 = vld [vmem:[#allocation7 + $0x320] sm:$0xf]  ;;  %v3816_v31 = vor.u32 %v4644_v18, %v3815_v15  ;;  %v4698_v11 = vld [vmem:[#allocation7 + $0x1cc] sm:$0xf]  ;;  %v3865_v18 = vld [vmem:[#allocation7 + $0x78] sm:$0xf0] }
 0x115   :  { %2512 = vmatpush.bf16.msrb.mxu0 %v4288_v57  ;;  %v5094_v9 = vpack.c.bf16 %v1685_v48, %v1685_v48  ;;  %v4065_v57 = vld [vmem:[#allocation7 + $0x210] sm:$0xf0]  ;;  %v3975_v48 = vld [vmem:[#allocation7 + $0x148] sm:$0xf]  ;;  %v3884_v15 = vor.u32 %v4658_v2, %v3881_v6  ;;  %v4732_v6 = vld [vmem:[#allocation7 + $0x2d4] sm:$0xf0] }
 0x116   :  { %2529 = vmatpush.bf16.msra.mxu3 %v3844_v28  ;;  %v4759_v28 = vld [vmem:[#allocation7 + $0x3ac] sm:$0xf0] }
 0x117   :  { %v4272_v33 = vor.u32 %v4759_v28, %v4271_v27  ;;  %2493 = vmatmul.bf16.vlgmr.msrb.gmra.mxu1 %v5094_v9  ;;  %v5097_v42 = vpop.f32.mrf.mxu0  ;;  %v3929_v27 = vld [vmem:[#allocation7 + $0xf8] sm:$0xf0]  ;;  %v4208_v28 = vor.u32 %v4743_v24, %v4207_v23  ;;  %v4650_v24 = vld [vmem:[#allocation7 + $0x4c] sm:$0xf] }
 0x118   :  { %2543 = vmatpush.bf16.msra.mxu1 %v3956_v20  ;;  %v1500_v40 = vpop.f32.mrf.mxu3  ;;  %2553 = vmatpush.bf16.msra.mxu2 %v4132_v32  ;;  %v4696_v20 = vld [vmem:[#allocation7 + $0x1b4] sm:$0xf0]  ;;  %v5099_v50 = vpop.f32.mrf.mxu1  ;;  %v3959_v32 = vld [vmem:[#allocation7 + $0x128] sm:$0xf] }
 0x119   :  { %2513 = vmatpush.bf16.msrb.mxu0 %v4272_v33  ;;  %v4024_v58 = vor.u32 %v4696_v20, %v4023_v49  ;;  %v4680_v33 = vld [vmem:[#allocation7 + $0x134] sm:$0xf0]  ;;  %v4305_v49 = vld [vmem:[#allocation7 + $0x3f0] sm:$0xf0]  ;;  %v310_v20 = vperm.slane %v302_v30, 0 }
 0x11a   :  { %2530 = vmatpush.bf16.msra.mxu3 %v3828_v44  ;;  %v4656_v44 = vld [vmem:[#allocation7 + $0x74] sm:$0xf0] }
 0x11b   :  { %v3864_v51 = vor.u32 %v4656_v44, %v3863_v36  ;;  %v3932_v36 = vor.u32 %v4670_v26, %v3929_v27  ;;  %v4739_v44 = vld [vmem:[#allocation7 + $0x30c] sm:$0xf0]  ;;  %v3849_v26 = vld [vmem:[#allocation7 + $0x58] sm:$0xf0]  ;;  %v4749_v27 = vld [vmem:[#allocation7 + $0x364] sm:$0xf] }
 0x11c   :  { %2544 = vmatpush.bf16.msra.mxu1 %v3940_v39  ;;  %2554 = vmatpush.bf16.msra.mxu2 %v4116_v45  ;;  %v3848_v39 = vor.u32 %v4652_v60, %v3847_v54  ;;  %v3913_v45 = vld [vmem:[#allocation7 + $0xd8] sm:$0xf0]  ;;  %v3960_v54 = vor.u32 %v4680_v33, %v3959_v32  ;;  %v4662_v60 = vld [vmem:[#allocation7 + $0xac] sm:$0xf] }
 0x11d   :  { %2514 = vmatpush.bf16.msrb.mxu0 %v4256_v12  ;;  %v3916_v55 = vor.u32 %v4666_v37, %v3913_v45  ;;  %v4009_v32 = vld [vmem:[#allocation7 + $0x198] sm:$0xf0] }
 0x11e   :  { %2531 = vmatpush.bf16.msra.mxu3 %v3812_v61  ;;  %v4239_v61 = vld [vmem:[#allocation7 + $0x360] sm:$0xf]  ;;  %v3833_v45 = vld [vmem:[#allocation7 + $0x38] sm:$0xf0] }
 0x11f   :  { %v4240_v63 = vor.u32 %v4751_v29, %v4239_v61  ;;  %v1539_v4 = vpop.f32.mrf.mxu0  ;;  %v4761_v61 = vld [vmem:[#allocation7 + $0x3c4] sm:$0xf]  ;;  %v4289_v29 = vld [vmem:[#allocation7 + $0x3d0] sm:$0xf0] }
 0x120   :  { %2589 = vmatpush.bf16.msrb.mxu1 %v4056_v25  ;;  %2555 = vmatpush.bf16.msra.mxu2 %v4100_v59  ;;  %v1513_v16 = vpop.f32.mrf.mxu1  ;;  %v4684_v25 = vld [vmem:[#allocation7 + $0x154] sm:$0xf0]  ;;  %v3897_v59 = vld [vmem:[#allocation7 + $0xb8] sm:$0xf0] }
 0x121   :  { %2532 = vmatmul.bf16.vlgmr.msra.gmra.mxu3 %v5087_v53  ;;  %2515 = vmatpush.bf16.msrb.mxu0 %v4240_v63  ;;  %v4057_v63 = vld [vmem:[#allocation7 + $0x1f8] sm:$0xf0]  ;;  %v3900_v1 = vor.u32 %v4662_v60, %v3897_v59  ;;  %v4654_v16 = vld [vmem:[#allocation7 + $0x6c] sm:$0xf] }
 0x122   :  { %2576 = vmatpush.bf16.msrb.mxu3 %v3928_v34  ;;  %v4692_v34 = vld [vmem:[#allocation7 + $0x194] sm:$0xf0]  ;;  %v3868_v23 = vor.u32 %v4654_v16, %v3865_v18  ;;  %v4642_v60 = vld [vmem:[#allocation7 + $0xc] sm:$0xf] }
 0x123   :  { %v4008_v5 = vor.u32 %v4692_v34, %v4007_v62  ;;  %v5105_v14 = vpop.f32.mrf.mxu2  ;;  %v1512_v62 = vadd.f32 %v5099_v50, %v310_v20  ;;  %v4702_v34 = vld [vmem:[#allocation7 + $0x1ec] sm:$0xf]  ;;  %v4041_v50 = vld [vmem:[#allocation7 + $0x1d8] sm:$0xf0]  ;;  %v4728_v18 = vld [vmem:[#allocation7 + $0x2b4] sm:$0xf0] }
 0x124   :  { %2590 = vmatpush.bf16.msrb.mxu1 %v4040_v43  ;;  %v5101_v3 = vpop.f32.mrf.mxu3  ;;  %2556 = vmatpush.bf16.msra.mxu2 %v4084_v7  ;;  %v4191_v43 = vld [vmem:[#allocation7 + $0x300] sm:$0xf]  ;;  %v4757_v7 = vld [vmem:[#allocation7 + $0x3a4] sm:$0xf]  ;;  %v4686_v20 = vld [vmem:[#allocation7 + $0x16c] sm:$0xf] }
 0x125   :  { %v4192_v46 = vor.u32 %v4739_v44, %v4191_v43 }
 0x126   :  { %2577 = vmatpush.bf16.msrb.mxu3 %v3912_v8  ;;  %v4223_v8 = vld [vmem:[#allocation7 + $0x340] sm:$0xf] }
 0x127   :  { %v4224_v13 = vor.u32 %v4747_v10, %v4223_v8  ;;  %2545 = vmatmul.bf16.vlgmr.msra.gmra.mxu1 %v5094_v9  ;;  %v5109_v40 = vpop.f32.mrf.mxu0  ;;  %v4273_v8 = vld [vmem:[#allocation7 + $0x3b0] sm:$0xf0]  ;;  %v1525_v10 = vadd.f32 %v5101_v3, %v1512_v62 }
 0x128   :  { %2591 = vmatpush.bf16.msrb.mxu1 %v4024_v58  ;;  %v4676_v58 = vld [vmem:[#allocation7 + $0x114] sm:$0xf0]  ;;  %v4276_v41 = vor.u32 %v4757_v7, %v4273_v8  ;;  %v4209_v62 = vld [vmem:[#allocation7 + $0x330] sm:$0xf0] }
 0x129   :  { %2516 = vmatpush.bf16.msrb.mxu0 %v4224_v13  ;;  %v3944_v0 = vor.u32 %v4676_v58, %v3943_v56  ;;  %v4183_v56 = vld [vmem:[#allocation7 + $0x2e8] sm:$0xf]  ;;  %v4736_v58 = vld [vmem:[#allocation7 + $0x2f4] sm:$0xf0] }
 0x12a   :  { %2578 = vmatpush.bf16.msrb.mxu3 %v3896_v22  ;;  %v4068_v22 = vor.u32 %v4705_v19, %v4065_v57  ;;  %v4753_v19 = vld [vmem:[#allocation7 + $0x384] sm:$0xf]  ;;  %v4257_v57 = vld [vmem:[#allocation7 + $0x390] sm:$0xf0]  ;;  %v4184_v2 = vor.u32 %v4736_v58, %v4183_v56 }
 0x12b   :  { %v1552_v12 = vpop.f32.mrf.mxu2  ;;  %v4260_v3 = vor.u32 %v4753_v19, %v4257_v57  ;;  %v303_v19 = vperm.slane %v5103_v52, 4 }
 0x12c   :  { %2592 = vmatpush.bf16.msrb.mxu1 %v4008_v5  ;;  %v1526_v38 = vpop.f32.mrf.mxu3  ;;  %2557 = vmatpush.bf16.msra.mxu2 %v4068_v22  ;;  %v4060_v5 = vor.u32 %v4702_v34, %v4057_v63  ;;  %v4025_v22 = vld [vmem:[#allocation7 + $0x1b8] sm:$0xf0]  ;;  %v4682_v63 = vld [vmem:[#allocation7 + $0x14c] sm:$0xf] }
 0x12d   :  { %2517 = vmatpush.bf16.msrb.mxu0 %v4208_v28  ;;  %v4241_v28 = vld [vmem:[#allocation7 + $0x370] sm:$0xf0]  ;;  %v4646_v38 = vld [vmem:[#allocation7 + $0x2c] sm:$0xf] }
 0x12e   :  { %2579 = vmatpush.bf16.msrb.mxu3 %v3880_v35  ;;  %v3976_v35 = vor.u32 %v4684_v25, %v3975_v48  ;;  %v4694_v48 = vld [vmem:[#allocation7 + $0x1ac] sm:$0xf] }
 0x12f   :  { %v1591_v4 = vpop.f32.mrf.mxu0  ;;  %v4028_v25 = vor.u32 %v4694_v48, %v4025_v22  ;;  %v3945_v48 = vld [vmem:[#allocation7 + $0x118] sm:$0xf0] }
 0x130   :  { %2593 = vmatpush.bf16.msrb.mxu1 %v3992_v21  ;;  %v1538_v21 = vadd.f32 %v5097_v42, %v1525_v10  ;;  %v4244_v42 = vor.u32 %v4749_v27, %v4241_v28  ;;  %v4737_v10 = vld [vmem:[#allocation7 + $0x304] sm:$0xf]  ;;  %v4119_v27 = vld [vmem:[#allocation7 + $0x268] sm:$0xf]  ;;  %v4720_v28 = vld [vmem:[#allocation7 + $0x274] sm:$0xf0] }
 0x131   :  { %2518 = vmatpush.bf16.msrb.mxu0 %v4192_v46  ;;  %v4745_v46 = vld [vmem:[#allocation7 + $0x344] sm:$0xf] }
 0x132   :  { %2580 = vmatpush.bf16.msrb.mxu3 %v3864_v51  ;;  %v4308_v51 = vor.u32 %v4765_v47, %v4305_v49  ;;  %v1551_v30 = vadd.f32 %v5105_v14, %v1538_v21  ;;  %v4225_v47 = vld [vmem:[#allocation7 + $0x350] sm:$0xf0]  ;;  %v3993_v14 = vld [vmem:[#allocation7 + $0x178] sm:$0xf0]  ;;  %v4674_v21 = vld [vmem:[#allocation7 + $0x10c] sm:$0xf] }
 0x133   :  { %v3996_v59 = vor.u32 %v4686_v20, %v3993_v14  ;;  %v4071_v14 = vld [vmem:[#allocation7 + $0x208] sm:$0xf] }
 0x134   :  { %2594 = vmatpush.bf16.msrb.mxu1 %v3976_v35 }
 0x135   :  { %2563 = vmatpush.bf16.msra.mxu0 %v4308_v51  ;;  %v4228_v51 = vor.u32 %v4745_v46, %v4225_v47 }
 0x136   :  { %2581 = vmatpush.bf16.msrb.mxu3 %v3848_v39  ;;  %v4292_v39 = vor.u32 %v4761_v61, %v4289_v29  ;;  %v3817_v61 = vld [vmem:[#allocation7 + $0x18] sm:$0xf0]  ;;  %v4741_v29 = vld [vmem:[#allocation7 + $0x324] sm:$0xf] }
 0x138   :  { %2595 = vmatpush.bf16.msrb.mxu1 %v3960_v54  ;;  %v1563_v13 = vpop.f32.mrf.mxu1 }
 0x139   :  { %2564 = vmatpush.bf16.msra.mxu0 %v4292_v39  ;;  %v1564_v35 = vadd.f32 %v1563_v13, %v1551_v30  ;;  %v3977_v39 = vld [vmem:[#allocation7 + $0x158] sm:$0xf0] }
 0x13a   :  { %2582 = vmatpush.bf16.msrb.mxu3 %v3832_v17  ;;  %v4044_v17 = vor.u32 %v4698_v11, %v4041_v50  ;;  %v3980_v7 = vor.u32 %v4682_v63, %v3977_v39  ;;  %v4193_v11 = vld [vmem:[#allocation7 + $0x310] sm:$0xf0]  ;;  %v4678_v50 = vld [vmem:[#allocation7 + $0x12c] sm:$0xf]  ;;  %v4768_v63 = vld [vmem:[#allocation7 + $0x3f4] sm:$0xf0] }
 0x13b   :  { %v5117_v33 = vpop.f32.mrf.mxu0 }
 0x13c   :  { %2596 = vmatpush.bf16.msrb.mxu1 %v3944_v0 }
 0x13d   :  { %2565 = vmatpush.bf16.msra.mxu0 %v4276_v41  ;;  %v3961_v41 = vld [vmem:[#allocation7 + $0x138] sm:$0xf0] }
 0x13e   :  { %2583 = vmatpush.bf16.msrb.mxu3 %v3816_v31  ;;  %v4690_v31 = vld [vmem:[#allocation7 + $0x18c] sm:$0xf]  ;;  %v3964_v57 = vor.u32 %v4678_v50, %v3961_v41 }
 0x13f   :  { %2597 = vmatmul.bf16.vlgmr.msrb.gmra.mxu1 %v5094_v9  ;;  %v4012_v44 = vor.u32 %v4690_v31, %v4009_v32  ;;  %v4120_v32 = vor.u32 %v4720_v28, %v4119_v27  ;;  %v4722_v41 = vld [vmem:[#allocation7 + $0x28c] sm:$0xf] }
 0x140   :  { %2641 = vmatpush.bf16.msra.mxu1 %v4060_v5  ;;  %v1565_v37 = vpop.f32.mrf.mxu1  ;;  %v4167_v5 = vld [vmem:[#allocation7 + $0x2c8] sm:$0xf] }
 0x141   :  { %2584 = vmatmul.bf16.vlgmr.msrb.gmra.mxu3 %v5087_v53  ;;  %2566 = vmatpush.bf16.msra.mxu0 %v4260_v3  ;;  %v4168_v16 = vor.u32 %v4732_v6, %v4167_v5  ;;  %v4135_v3 = vld [vmem:[#allocation7 + $0x288] sm:$0xf]  ;;  %v4153_v5 = vld [vmem:[#allocation7 + $0x2b8] sm:$0xf0] }
 0x142   :  { %2628 = vmatpush.bf16.msra.mxu3 %v3932_v36  ;;  %v3852_v36 = vor.u32 %v4650_v24, %v3849_v26  ;;  %v311_v24 = vperm.slane %v303_v19, 0  ;;  %v4718_v19 = vld [vmem:[#allocation7 + $0x26c] sm:$0xf] }
 0x143   :  { %v1602_v12 = vpop.f32.mrf.mxu2  ;;  %v1617_v0 = vpop.f32.mrf.mxu0 }
 0x144   :  { %2642 = vmatpush.bf16.msra.mxu1 %v4044_v17  ;;  %v1576_v43 = vpop.f32.mrf.mxu3  ;;  %v4151_v17 = vld [vmem:[#allocation7 + $0x2a8] sm:$0xf]  ;;  %v1603_v30 = vadd.f32 %v1602_v12, %v311_v24  ;;  %v4105_v24 = vld [vmem:[#allocation7 + $0x258] sm:$0xf0] }
 0x145   :  { %v1577_v49 = vadd.f32 %v1576_v43, %v1564_v35  ;;  %2567 = vmatpush.bf16.msra.mxu0 %v4244_v42  ;;  %v4152_v22 = vor.u32 %v4728_v18, %v4151_v17  ;;  %v4103_v42 = vld [vmem:[#allocation7 + $0x248] sm:$0xf]  ;;  %v4716_v35 = vld [vmem:[#allocation7 + $0x254] sm:$0xf0] }
 0x146   :  { %2629 = vmatpush.bf16.msra.mxu3 %v3916_v55  ;;  %v3836_v55 = vor.u32 %v4646_v38, %v3833_v45  ;;  %v4104_v37 = vor.u32 %v4716_v35, %v4103_v42  ;;  %v4087_v38 = vld [vmem:[#allocation7 + $0x228] sm:$0xf]  ;;  %v4712_v43 = vld [vmem:[#allocation7 + $0x234] sm:$0xf0] }
 0x147   :  { %v1590_v54 = vadd.f32 %v5109_v40, %v1577_v49  ;;  %v3820_v40 = vor.u32 %v4642_v60, %v3817_v61  ;;  %v4088_v20 = vor.u32 %v4712_v43, %v4087_v38  ;;  %v4169_v61 = vld [vmem:[#allocation7 + $0x2d8] sm:$0xf0]  ;;  %v4748_v42 = vld [vmem:[#allocation7 + $0x354] sm:$0xf0]  ;;  %v4215_v43 = vld [vmem:[#allocation7 + $0x328] sm:$0xf] }
 0x148   :  { %2643 = vmatpush.bf16.msra.mxu1 %v4028_v25  ;;  %v3948_v25 = vor.u32 %v4674_v21, %v3945_v48  ;;  %v4263_v21 = vld [vmem:[#allocation7 + $0x388] sm:$0xf]  ;;  %v4756_v48 = vld [vmem:[#allocation7 + $0x394] sm:$0xf0]  ;;  %v4073_v38 = vld [vmem:[#allocation7 + $0x218] sm:$0xf0] }
 0x149   :  { %v1686_v34 = vmax.f32 %v1590_v54, 0.0  ;;  %2568 = vmatpush.bf16.msra.mxu0 %v4228_v51  ;;  %v4734_v51 = vld [vmem:[#allocation7 + $0x2ec] sm:$0xf]  ;;  %v4185_v54 = vld [vmem:[#allocation7 + $0x2f8] sm:$0xf0] }
 0x14a   :  { %2630 = vmatpush.bf16.msra.mxu3 %v3900_v1  ;;  %v4212_v1 = vor.u32 %v4741_v29, %v4209_v62  ;;  %v4188_v58 = vor.u32 %v4734_v51, %v4185_v54  ;;  %v4762_v54 = vld [vmem:[#allocation7 + $0x3cc] sm:$0xf] }
 0x14b   :  { %v5120_v4 = vpack.c.bf16 %v1686_v34, %v1686_v34  ;;  %v1604_v13 = vpop.f32.mrf.mxu2  ;;  %v4311_v34 = vld [vmem:[#allocation7 + $0x3e8] sm:$0xf] }
 0x14c   :  { %2644 = vmatpush.bf16.msra.mxu1 %v4012_v44  ;;  %v1578_v8 = vpop.f32.mrf.mxu3  ;;  %v4137_v13 = vld [vmem:[#allocation7 + $0x298] sm:$0xf0] }
 0x14d   :  { %2506 = vmatmul.bf16.vlgmr.msrb.gmra.mxu2 %v5120_v4  ;;  %2569 = vmatpush.bf16.msra.mxu0 %v4212_v1  ;;  %v4764_v8 = vld [vmem:[#allocation7 + $0x3d4] sm:$0xf0]  ;;  %v4140_v17 = vor.u32 %v4722_v41, %v4137_v13 }
 0x14e   :  { %2631 = vmatpush.bf16.msra.mxu3 %v3884_v15  ;;  %v4196_v15 = vor.u32 %v4737_v10, %v4193_v11  ;;  %2602 = vmatpush.bf16.msrb.mxu2 %v4184_v2  ;;  %v4312_v2 = vor.u32 %v4768_v63, %v4311_v34  ;;  %v4750_v63 = vld [vmem:[#allocation7 + $0x36c] sm:$0xf] }
 0x150   :  { %2645 = vmatpush.bf16.msra.mxu1 %v3996_v59  ;;  %v4730_v59 = vld [vmem:[#allocation7 + $0x2cc] sm:$0xf] }
 0x151   :  { %2570 = vmatpush.bf16.msra.mxu0 %v4196_v15  ;;  %v4172_v1 = vor.u32 %v4730_v59, %v4169_v61  ;;  %v4279_v15 = vld [vmem:[#allocation7 + $0x3a8] sm:$0xf]  ;;  %v5135_v59 = vld [vmem:[#allocation10] sm:$0x77] }
 0x152   :  { %2632 = vmatpush.bf16.msra.mxu3 %v3868_v23  ;;  %2603 = vmatpush.bf16.msrb.mxu2 %v4168_v16  ;;  %v4724_v23 = vld [vmem:[#allocation7 + $0x294] sm:$0xf0]  ;;  %v1820_v61 = vperm.slane %v5135_v59, 1  ;;  %v1821_v13 = vperm.slane %v5135_v59, 5 }
 0x153   :  { %v4136_v26 = vor.u32 %v4724_v23, %v4135_v3  ;;  %v4760_v16 = vld [vmem:[#allocation7 + $0x3b4] sm:$0xf0]  ;;  %v4264_v3 = vor.u32 %v4756_v48, %v4263_v21  ;;  %v4714_v23 = vld [vmem:[#allocation7 + $0x24c] sm:$0xf] }
 0x154   :  { %2646 = vmatpush.bf16.msra.mxu1 %v3980_v7  ;;  %v4295_v7 = vld [vmem:[#allocation7 + $0x3c8] sm:$0xf]  ;;  %v4280_v18 = vor.u32 %v4760_v16, %v4279_v15  ;;  %v4108_v27 = vor.u32 %v4714_v23, %v4105_v24  ;;  %v4738_v15 = vld [vmem:[#allocation7 + $0x30c] sm:$0xf]  ;;  %v4201_v16 = vld [vmem:[#allocation7 + $0x318] sm:$0xf0] }
 0x155   :  { %v4296_v50 = vor.u32 %v4764_v8, %v4295_v7  ;;  %v4776_v23 = vld [vmem:[#allocation8 + $0x38] sm:$0xff] }
 0x156   :  { %2633 = vmatpush.bf16.msra.mxu3 %v3852_v36  ;;  %2604 = vmatpush.bf16.msrb.mxu2 %v4152_v22 }
 0x158   :  { %2647 = vmatpush.bf16.msra.mxu1 %v3964_v57  ;;  %v1628_v31 = vpop.f32.mrf.mxu1  ;;  %v4121_v57 = vld [vmem:[#allocation7 + $0x278] sm:$0xf0] }
 0x159   :  { %v4124_v22 = vor.u32 %v4718_v19, %v4121_v57  ;;  %v4204_v19 = vor.u32 %v4738_v15, %v4201_v16  ;;  %v1829_v57 = vperm.slane %v1821_v13, 1  ;;  %v4799_v13 = vld [vmem:[#allocation8 + $0xf0] sm:$0xff]  ;;  %v4798_v16 = vld [vmem:[#allocation8 + $0xe8] sm:$0xff] }
 0x15a   :  { %2634 = vmatpush.bf16.msra.mxu3 %v3836_v55  ;;  %2605 = vmatpush.bf16.msrb.mxu2 %v4136_v26  ;;  %v4752_v26 = vld [vmem:[#allocation7 + $0x374] sm:$0xf0] }
 0x15b   :  { %v1667_v36 = vpop.f32.mrf.mxu0 }
 0x15c   :  { %2648 = vmatpush.bf16.msra.mxu1 %v3948_v25  ;;  %v4247_v25 = vld [vmem:[#allocation7 + $0x368] sm:$0xf] }
 0x15d   :  { %2558 = vmatmul.bf16.vlgmr.msra.gmra.mxu2 %v5120_v4  ;;  %v4248_v28 = vor.u32 %v4752_v26, %v4247_v25  ;;  %v4775_v26 = vld [vmem:[#allocation8 + $0x30] sm:$0xff] }
 0x15e   :  { %2635 = vmatpush.bf16.msra.mxu3 %v3820_v40  ;;  %2606 = vmatpush.bf16.msrb.mxu2 %v4120_v32  ;;  %v4726_v40 = vld [vmem:[#allocation7 + $0x2ac] sm:$0xf]  ;;  %v4231_v32 = vld [vmem:[#allocation7 + $0x348] sm:$0xf] }
 0x15f   :  { %2649 = vmatmul.bf16.vlgmr.msra.gmra.mxu1 %v5094_v9  ;;  %v4708_v9 = vld [vmem:[#allocation7 + $0x214] sm:$0xf0]  ;;  %v4156_v10 = vor.u32 %v4726_v40, %v4153_v5  ;;  %v4233_v40 = vld [vmem:[#allocation7 + $0x358] sm:$0xf0] }
 0x160   :  { %v1630_v45 = vpop.f32.mrf.mxu1  ;;  %v4072_v56 = vor.u32 %v4708_v9, %v4071_v14  ;;  %v4766_v14 = vld [vmem:[#allocation7 + $0x3ec] sm:$0xf]  ;;  %v4313_v9 = vld [vmem:[#allocation7 + $0x3f8] sm:$0xf0] }
 0x161   :  { %2636 = vmatmul.bf16.vlgmr.msra.gmra.mxu3 %v5087_v53  ;;  %v1616_v53 = vadd.f32 %v5117_v33, %v1603_v30  ;;  %v4710_v30 = vld [vmem:[#allocation7 + $0x22c] sm:$0xf]  ;;  %v4316_v51 = vor.u32 %v4766_v14, %v4313_v9  ;;  %v4780_v14 = vld [vmem:[#allocation8 + $0x58] sm:$0xff] }
 0x162   :  { %2607 = vmatpush.bf16.msrb.mxu2 %v4104_v37  ;;  %v4706_v37 = vld [vmem:[#allocation7 + $0x20c] sm:$0xf]  ;;  %2945 = vmatpush.bf16.msrb.mxu3 %v4776_v23  ;;  %v4792_v9 = vld [vmem:[#allocation8 + $0xb8] sm:$0xff]  ;;  %v4795_v23 = vld [vmem:[#allocation8 + $0xd0] sm:$0xff] }
 0x163   :  { %v1629_v44 = vadd.f32 %v1628_v31, %v1616_v53  ;;  %v1654_v49 = vpop.f32.mrf.mxu2  ;;  %v1669_v33 = vpop.f32.mrf.mxu0  ;;  %v4089_v31 = vld [vmem:[#allocation7 + $0x238] sm:$0xf0]  ;;  %v4076_v45 = vor.u32 %v4706_v37, %v4073_v38  ;;  %v4771_v37 = vld [vmem:[#allocation8 + $0x10] sm:$0xff] }
 0x164   :  { %v1641_v46 = vpop.f32.mrf.mxu3  ;;  %v4092_v53 = vor.u32 %v4710_v30, %v4089_v31  ;;  %v4297_v33 = vld [vmem:[#allocation7 + $0x3d8] sm:$0xf0]  ;;  %v4774_v30 = vld [vmem:[#allocation8 + $0x28] sm:$0xff]  ;;  %v4783_v38 = vld [vmem:[#allocation8 + $0x70] sm:$0xff] }
 0x165   :  { %v1642_v47 = vadd.f32 %v1641_v46, %v1629_v44  ;;  %v4744_v44 = vld [vmem:[#allocation7 + $0x334] sm:$0xf0] }
 0x166   :  { %2608 = vmatpush.bf16.msrb.mxu2 %v4088_v20  ;;  %v4216_v46 = vor.u32 %v4744_v44, %v4215_v43  ;;  %2946 = vmatpush.bf16.msrb.mxu3 %v4775_v26  ;;  %v4770_v43 = vld [vmem:[#allocation8 + $0x8] sm:$0xff] }
 0x167   :  { %v1655_v12 = vadd.f32 %v1654_v49, %v1642_v47  ;;  %v4199_v47 = vld [vmem:[#allocation7 + $0x308] sm:$0xf]  ;;  %v4740_v49 = vld [vmem:[#allocation7 + $0x314] sm:$0xf0] }
 0x168   :  { %v1680_v60 = vpop.f32.mrf.mxu1  ;;  %v4782_v44 = vld [vmem:[#allocation8 + $0x68] sm:$0xff] }
 0x169   :  { %v1668_v55 = vadd.f32 %v1667_v36, %v1655_v12  ;;  %v4232_v36 = vor.u32 %v4748_v42, %v4231_v32  ;;  %v4200_v12 = vor.u32 %v4740_v49, %v4199_v47  ;;  %v4773_v42 = vld [vmem:[#allocation8 + $0x20] sm:$0xff] }
 0x16a   :  { %2609 = vmatpush.bf16.msrb.mxu2 %v4072_v56  ;;  %v4758_v56 = vld [vmem:[#allocation7 + $0x3ac] sm:$0xf]  ;;  %2947 = vmatpush.bf16.msrb.mxu3 %v4774_v30  ;;  %v4781_v47 = vld [vmem:[#allocation8 + $0x60] sm:$0xff] }
 0x16b   :  { %v1681_v29 = vadd.f32 %v1680_v60, %v1668_v55  ;;  %v1656_v39 = vpop.f32.mrf.mxu2  ;;  %v4300_v55 = vor.u32 %v4762_v54, %v4297_v33  ;;  %v4779_v54 = vld [vmem:[#allocation8 + $0x50] sm:$0xff] }
 0x16c   :  { %v1643_v62 = vpop.f32.mrf.mxu3  ;;  %v4249_v39 = vld [vmem:[#allocation7 + $0x378] sm:$0xf0]  ;;  %v4791_v33 = vld [vmem:[#allocation8 + $0xb0] sm:$0xff] }
 0x16d   :  { %v1687_v0 = vmax.f32 %v1681_v29, 0.0  ;;  %2610 = vmatmul.bf16.vlgmr.msrb.gmra.mxu2 %v5120_v4  ;;  %v4754_v29 = vld [vmem:[#allocation7 + $0x38c] sm:$0xf]  ;;  %v4265_v62 = vld [vmem:[#allocation7 + $0x398] sm:$0xf0] }
 0x16e   :  { %2654 = vmatpush.bf16.msra.mxu2 %v4188_v58  ;;  %v4281_v58 = vld [vmem:[#allocation7 + $0x3b8] sm:$0xf0]  ;;  %v4268_v34 = vor.u32 %v4754_v29, %v4265_v62  ;;  %2948 = vmatpush.bf16.msrb.mxu3 %v4773_v42  ;;  %v4777_v29 = vld [vmem:[#allocation8 + $0x40] sm:$0xff] }
 0x16f   :  { %v5128_v6 = vpack.c.bf16 %v1687_v0, %v1687_v0  ;;  %v4284_v60 = vor.u32 %v4758_v56, %v4281_v58  ;;  %v4252_v0 = vor.u32 %v4750_v63, %v4249_v39  ;;  %v4789_v62 = vld [vmem:[#allocation8 + $0xa0] sm:$0xff]  ;;  %v4788_v63 = vld [vmem:[#allocation8 + $0x98] sm:$0xff]  ;;  %v4787_v39 = vld [vmem:[#allocation8 + $0x90] sm:$0xff] }
 0x170   :  { %v1682_v11 = vpop.f32.mrf.mxu1 }
 0x171   :  { %2519 = vmatmul.bf16.vlgmr.msrb.gmra.mxu0 %v5128_v6  ;;  %v4742_v11 = vld [vmem:[#allocation7 + $0x32c] sm:$0xf] }
 0x172   :  { %2655 = vmatpush.bf16.msra.mxu2 %v4172_v1  ;;  %2615 = vmatpush.bf16.msrb.mxu0 %v4312_v2  ;;  %v4746_v2 = vld [vmem:[#allocation7 + $0x34c] sm:$0xf] }
 0x176   :  { %2656 = vmatpush.bf16.msra.mxu2 %v4156_v10  ;;  %2616 = vmatpush.bf16.msrb.mxu0 %v4296_v50  ;;  %v4236_v10 = vor.u32 %v4746_v2, %v4233_v40  ;;  %v4217_v50 = vld [vmem:[#allocation7 + $0x338] sm:$0xf0]  ;;  %v4786_v2 = vld [vmem:[#allocation8 + $0x88] sm:$0xff] }
 0x177   :  { %v4220_v41 = vor.u32 %v4742_v11, %v4217_v50  ;;  %v4800_v11 = vld [vmem:[#allocation8 + $0xf8] sm:$0xff] }
 0x17a   :  { %2657 = vmatpush.bf16.msra.mxu2 %v4140_v17  ;;  %2617 = vmatpush.bf16.msrb.mxu0 %v4280_v18 }
 0x17e   :  { %2658 = vmatpush.bf16.msra.mxu2 %v4124_v22  ;;  %2618 = vmatpush.bf16.msrb.mxu0 %v4264_v3  ;;  %v1822_v3 = vperm.slane %v5103_v52, 1 }
 0x180   :  { %v1830_v25 = vperm.slane %v1822_v3, 1 }
 0x181   :  { %2571 = vmatmul.bf16.vlgmr.msra.gmra.mxu0 %v5128_v6 }
 0x182   :  { %2659 = vmatpush.bf16.msra.mxu2 %v4108_v27  ;;  %2619 = vmatpush.bf16.msrb.mxu0 %v4248_v28 }
 0x184   :  { %v2481_v35 = vpop.f32.mrf.mxu3 }
 0x186   :  { %2660 = vmatpush.bf16.msra.mxu2 %v4092_v53  ;;  %2620 = vmatpush.bf16.msrb.mxu0 %v4232_v36  ;;  %v4772_v53 = vld [vmem:[#allocation8 + $0x18] sm:$0xff] }
 0x187   :  { %2949 = vmatpush.bf16.msrb.mxu3 %v4772_v53 }
 0x18a   :  { %2661 = vmatpush.bf16.msra.mxu2 %v4076_v45  ;;  %2621 = vmatpush.bf16.msrb.mxu0 %v4216_v46  ;;  %v1823_v45 = vperm.slane %v5103_v52, 5  ;;  %v4769_v46 = vld [vmem:[#allocation8] sm:$0xff]  ;;  %v4778_v52 = vld [vmem:[#allocation8 + $0x48] sm:$0xff] }
 0x18b   :  { %2950 = vmatpush.bf16.msrb.mxu3 %v4771_v37 }
 0x18c   :  { %v2483_v20 = vpop.f32.mrf.mxu3 }
 0x18d   :  { %2662 = vmatmul.bf16.vlgmr.msra.gmra.mxu2 %v5120_v4  ;;  %v1828_v4 = vperm.slane %v1820_v61, 1  ;;  %v1831_v20 = vperm.slane %v1823_v45, 1 }
 0x18e   :  { %2622 = vmatpush.bf16.msrb.mxu0 %v4200_v12  ;;  %2971 = vmatpush.bf16.msrb.mxu2 %v4792_v9 }
 0x18f   :  { %v2482_v1 = vadd.f32 %v2481_v35, %v1828_v4  ;;  %2951 = vmatpush.bf16.msrb.mxu3 %v4770_v43 }
 0x191   :  { %2623 = vmatmul.bf16.vlgmr.msrb.gmra.mxu0 %v5128_v6 }
 0x192   :  { %2667 = vmatpush.bf16.msra.mxu0 %v4316_v51  ;;  %2972 = vmatpush.bf16.msrb.mxu2 %v4791_v33 }
 0x193   :  { %2952 = vmatpush.bf16.msrb.mxu3 %v4769_v46 }
 0x194   :  { %v2494_v5 = vpop.f32.mrf.mxu1 }
 0x195   :  { %v5138_v8 = vadd.f32 %v2494_v5, %v2482_v1 }
 0x196   :  { %2668 = vmatpush.bf16.msra.mxu0 %v4300_v55 }
 0x19a   :  { %2669 = vmatpush.bf16.msra.mxu0 %v4284_v60  ;;  %v4790_v60 = vld [vmem:[#allocation8 + $0xa8] sm:$0xff] }
 0x19b   :  { %2973 = vmatpush.bf16.msrb.mxu2 %v4790_v60 }
 0x19c   :  { %v2496_v17 = vpop.f32.mrf.mxu1 }
 0x19e   :  { %2670 = vmatpush.bf16.msra.mxu0 %v4268_v34 }
 0x19f   :  { %2974 = vmatpush.bf16.msrb.mxu2 %v4789_v62 }
 0x1a2   :  { %2671 = vmatpush.bf16.msra.mxu0 %v4252_v0 }
 0x1a3   :  { %2975 = vmatpush.bf16.msrb.mxu2 %v4788_v63 }
 0x1a4   :  { %v2533_v7 = vpop.f32.mrf.mxu3  ;;  %v2546_v48 = vpop.f32.mrf.mxu1 }
 0x1a5   :  { %v2534_v21 = vadd.f32 %v2533_v7, %v1829_v57 }
 0x1a6   :  { %2672 = vmatpush.bf16.msra.mxu0 %v4236_v10  ;;  %v4785_v10 = vld [vmem:[#allocation8 + $0x80] sm:$0xff] }
 0x1a7   :  { %v5141_v22 = vadd.f32 %v2546_v48, %v2534_v21  ;;  %2976 = vmatpush.bf16.msrb.mxu2 %v4787_v39  ;;  %v4796_v21 = vld [vmem:[#allocation8 + $0xd8] sm:$0xff] }
 0x1aa   :  { %2673 = vmatpush.bf16.msra.mxu0 %v4220_v41 }
 0x1ab   :  { %2977 = vmatpush.bf16.msrb.mxu2 %v4786_v2 }
 0x1ac   :  { %v2535_v18 = vpop.f32.mrf.mxu3  ;;  %v2548_v24 = vpop.f32.mrf.mxu1 }
 0x1ad   :  { %v4797_v18 = vld [vmem:[#allocation8 + $0xe0] sm:$0xff] }
 0x1ae   :  { %2674 = vmatpush.bf16.msra.mxu0 %v4204_v19 }
 0x1af   :  { %2978 = vmatpush.bf16.msrb.mxu2 %v4785_v10 }
 0x1b1   :  { %2675 = vmatmul.bf16.vlgmr.msra.gmra.mxu0 %v5128_v6  ;;  %v4784_v6 = vld [vmem:[#allocation8 + $0x78] sm:$0xff] }
 0x1b2   :  { %2958 = vmatpush.bf16.msrb.mxu1 %v4784_v6  ;;  %2984 = vmatpush.bf16.msrb.mxu0 %v4800_v11 }
 0x1b6   :  { %2959 = vmatpush.bf16.msrb.mxu1 %v4783_v38  ;;  %2985 = vmatpush.bf16.msrb.mxu0 %v4799_v13 }
 0x1ba   :  { %2960 = vmatpush.bf16.msrb.mxu1 %v4782_v44  ;;  %2986 = vmatpush.bf16.msrb.mxu0 %v4798_v16 }
 0x1bc   :  { %v2598_v31 = vpop.f32.mrf.mxu1 }
 0x1be   :  { %2961 = vmatpush.bf16.msrb.mxu1 %v4781_v47  ;;  %2987 = vmatpush.bf16.msrb.mxu0 %v4797_v18 }
 0x1c2   :  { %2962 = vmatpush.bf16.msrb.mxu1 %v4780_v14  ;;  %2988 = vmatpush.bf16.msrb.mxu0 %v4796_v21  ;;  %v2752_v14 = vperm.slane %v5135_v59, 2 }
 0x1c4   :  { %v2585_v27 = vpop.f32.mrf.mxu3  ;;  %v2600_v36 = vpop.f32.mrf.mxu1 }
 0x1c5   :  { %v2586_v28 = vadd.f32 %v2585_v27, %v1830_v25  ;;  %v4794_v25 = vld [vmem:[#allocation8 + $0xc8] sm:$0xff]  ;;  %v4793_v27 = vld [vmem:[#allocation8 + $0xc0] sm:$0xff] }
 0x1c6   :  { %2963 = vmatpush.bf16.msrb.mxu1 %v4779_v54  ;;  %2989 = vmatpush.bf16.msrb.mxu0 %v4795_v23 }
 0x1c7   :  { %v5145_v32 = vadd.f32 %v2598_v31, %v2586_v28 }
 0x1ca   :  { %2964 = vmatpush.bf16.msrb.mxu1 %v4778_v52  ;;  %2990 = vmatpush.bf16.msrb.mxu0 %v4794_v25 }
 0x1cc   :  { %v2587_v35 = vpop.f32.mrf.mxu3 }
 0x1ce   :  { %2965 = vmatpush.bf16.msrb.mxu1 %v4777_v29  ;;  %2991 = vmatpush.bf16.msrb.mxu0 %v4793_v27 }
 0x1d0   :  { %v2507_v49 = vpop.f32.mrf.mxu2 }
 0x1d1   :  { %v2508_v1 = vadd.f32 %v2507_v49, %v5138_v8 }
 0x1d8   :  { %v2509_v56 = vpop.f32.mrf.mxu2 }
 0x1dc   :  { %v2650_v55 = vpop.f32.mrf.mxu1 }
 0x1e0   :  { %v2559_v4 = vpop.f32.mrf.mxu2 }
 0x1e1   :  { %v2560_v8 = vadd.f32 %v2559_v4, %v5141_v22 }
 0x1e4   :  { %v2637_v12 = vpop.f32.mrf.mxu3  ;;  %v2652_v34 = vpop.f32.mrf.mxu1 }
 0x1e5   :  { %v2638_v51 = vadd.f32 %v2637_v12, %v1831_v20 }
 0x1e7   :  { %v5148_v58 = vadd.f32 %v2650_v55, %v2638_v51 }
 0x1e8   :  { %v2561_v0 = vpop.f32.mrf.mxu2 }
 0x1ec   :  { %v2639_v61 = vpop.f32.mrf.mxu3 }
 0x1ee   :  { %v2520_v40 = vpop.f32.mrf.mxu0 }
 0x1ef   :  { %v2521_v5 = vadd.f32 %v2520_v40, %v2508_v1 }
 0x1f0   :  { %v2611_v50 = vpop.f32.mrf.mxu2 }
 0x1f1   :  { %v2680_v7 = vmax.f32 %v2521_v5, 0.0  ;;  %v2612_v26 = vadd.f32 %v2611_v50, %v5145_v32 }
 0x1f3   :  { %v2684_v41 = vpack.c.bf16 %v2680_v7, %v2680_v7 }
 0x1f5   :  { %2953 = vmatmul.bf16.vlgmr.msrb.gmra.mxu3 %v2684_v41 }
 0x1f6   :  { %v2522_v15 = vpop.f32.mrf.mxu0 }
 0x1f8   :  { %v2613_v17 = vpop.f32.mrf.mxu2 }
 0x1fe   :  { %v2572_v19 = vpop.f32.mrf.mxu0 }
 0x1ff   :  { %v2573_v57 = vadd.f32 %v2572_v19, %v2560_v8 }
 0x201   :  { %v2681_v48 = vmax.f32 %v2573_v57, 0.0 }
 0x203   :  { %v2685_v3 = vpack.c.bf16 %v2681_v48, %v2681_v48 }
 0x205   :  { %2966 = vmatmul.bf16.vlgmr.msrb.gmra.mxu1 %v2685_v3 }
 0x206   :  { %v2574_v24 = vpop.f32.mrf.mxu0 }
 0x20e   :  { %v2624_v28 = vpop.f32.mrf.mxu0 }
 0x20f   :  { %v2625_v30 = vadd.f32 %v2624_v28, %v2612_v26 }
 0x210   :  { %v2663_v31 = vpop.f32.mrf.mxu2 }
 0x211   :  { %v2682_v22 = vmax.f32 %v2625_v30, 0.0  ;;  %v2664_v6 = vadd.f32 %v2663_v31, %v5148_v58 }
 0x213   :  { %v2686_v42 = vpack.c.bf16 %v2682_v22, %v2682_v22 }
 0x215   :  { %2979 = vmatmul.bf16.vlgmr.msrb.gmra.mxu2 %v2686_v42 }
 0x216   :  { %v2626_v35 = vpop.f32.mrf.mxu0 }
 0x218   :  { %v2665_v53 = vpop.f32.mrf.mxu2 }
 0x22e   :  { %v2676_v36 = vpop.f32.mrf.mxu0 }
 0x22f   :  { %v2677_v37 = vadd.f32 %v2676_v36, %v2664_v6 }
 0x231   :  { %v2683_v38 = vmax.f32 %v2677_v37, 0.0 }
 0x233   :  { %v2687_v43 = vpack.c.bf16 %v2683_v38, %v2683_v38 }
 0x235   :  { %2992 = vmatmul.bf16.vlgmr.msrb.gmra.mxu0 %v2687_v43 }
 0x236   :  { %v2678_v44 = vpop.f32.mrf.mxu0 }
 0x278   :  { %v2954_v45 = vpop.f32.mrf.mxu3 }
 0x279   :  { %v2955_v9 = vadd.f32 %v2954_v45, %v2752_v14 }
 0x280   :  { %v2956_v32 = vpop.f32.mrf.mxu3 }
 0x282   :  { %v2967_v46 = vpop.f32.mrf.mxu1 }
 0x283   :  { %v2968_v12 = vadd.f32 %v2967_v46, %v2955_v9 }
 0x28a   :  { %v2969_v47 = vpop.f32.mrf.mxu1 }
 0x298   :  { %v2980_v49 = vpop.f32.mrf.mxu2 }
 0x299   :  { %v2981_v51 = vadd.f32 %v2980_v49, %v2968_v12 }
 0x2a0   :  { %v2982_v20 = vpop.f32.mrf.mxu2 }
 0x2b2   :  { %v2993_v54 = vpop.f32.mrf.mxu0 }
 0x2b3   :  { %v2994_v33 = vadd.f32 %v2993_v54, %v2981_v51 }
 0x2b5   :  { %2997 = vst [vmem:[#allocation11] sm:$0xff] %v2994_v33 }
 0x2b6   :  { %3008 = dma.vmem_to_hbm [thread:$0]  %s3004_s4, 128, %s3006_s21, [#allocation4]  }
 0x2ba   :  { %v2995_v55 = vpop.f32.mrf.mxu0 }
 0x2bb   :  { %4962 = dma.done.wait [#allocation4], 128  }
 0x2bc   :  { %4963 = vsyncadd [#allocation4], 4294967168 }
 0x2bd   :  { %3013 = vsyncpa [#allocation3], 1 }
 0x2be   :  { %3014 = vsyncpa [#allocation6], 1 }
 0x2bf   :  { %3015 = vsyncpa [#allocation9], 1 }
 0x2c0   :  { %3016 = vsyncpa [#allocation4], 1 }

</bundles_post_ra>
